<compile_context>
chip_gen: v5e
topology: v5e:2x2
jax: 0.10.0
libtpu: 0.0.40
codegen_flags: <defaults>
</compile_context>

<pallas_src>
import functools
import numpy as np
import jax
import jax.numpy as jnp
from jax.experimental import pallas as pl
from jax.experimental.pallas import tpu as pltpu

BN_EPS = 1e-5          # PyTorch BatchNorm1d default
HIDDEN_PAD = 128       # lane-dense padded projector hidden width (48 -> 128)
NPERSEG = 16           # Welch coherence segment length


# ----------------------------------------------------------------------------
# Kernel 1: fused backbone + projector, both streams in ONE invocation.
# TODO(synk): reference uses a ResNet backbone ("resnet" module not provided);
#             stand-in is a flatten + Linear feature extractor.
# TODO(synk): if a real backbone lands, add a K-tiled "arbitrary" grid axis
#             with an f32 accumulator and size tiles against v7x's 64 MiB/TC
#             VMEM (set vmem_limit_bytes in pltpu.CompilerParams).
# ----------------------------------------------------------------------------
def fused_forward_kernel(x_ref, wb_ref, bb_ref,
                         w1_ref, b1_ref, g1_ref, be1_ref,
                         w2_ref, b2_ref, g2_ref, be2_ref,
                         w3_ref, b3_ref,
                         out_ref, *, n):
    """Rows [0:n] are the x stream, [n:2n] the y stream.  BatchNorm statistics
    are computed per stream (training-mode BatchNorm1d of the reference)."""

    def bn_one(h, g, be):
        m = jnp.mean(h, axis=0, keepdims=True)
        v = jnp.mean((h - m) ** 2, axis=0, keepdims=True)   # biased var (train)
        return g * (h - m) * jax.lax.rsqrt(v + BN_EPS) + be

    def bn(h, g, be):
        return jnp.concatenate([bn_one(h[:n], g, be),
                                bn_one(h[n:], g, be)], axis=0)

    def mm(a, w_ref):   # bf16 MXU operands, f32 accumulation
        return jnp.dot(a.astype(jnp.bfloat16), w_ref[...],
                       preferred_element_type=jnp.float32)

    x = x_ref[...]                                 # already bf16 (pre-cast)
    phy = mm(x, wb_ref) + bb_ref[...]

    h1 = mm(phy, w1_ref) + b1_ref[...]
    r1 = jnp.maximum(bn(h1, g1_ref[...], be1_ref[...]), 0.0)
    h2 = mm(r1, w2_ref) + b2_ref[...]
    r2 = jnp.maximum(bn(h2, g2_ref[...], be2_ref[...]), 0.0)
    wave = mm(r2, w3_ref) + b3_ref[...]

    # Lane-dense packed output: lanes [0:E] = phy, [E:2E] = wave (E = 64).
    out_ref[...] = jnp.concatenate([phy, wave], axis=1)


def run_fused_forward(xy, p):
    """xy: (2N, in_dim) bf16 stacked x/y -> packed (2N, 2E) f32 [phy | wave]."""
    two_n, _ = xy.shape
    n = two_n // 2
    e = p["wb_k"].shape[1]

    args = (xy, p["wb_k"], p["bb"],
            p["w1_k"], p["b1_p"], p["g1_p"], p["be1_p"],
            p["w2_k"], p["b2_p"], p["g2_p"], p["be2_p"],
            p["w3_k"], p["b3"])
    vmem = pl.BlockSpec(memory_space=pltpu.MemorySpace.VMEM)

    return pl.pallas_call(
        functools.partial(fused_forward_kernel, n=n),
        out_shape=jax.ShapeDtypeStruct((two_n, 2 * e), jnp.float32),
        in_specs=[vmem] * len(args),
        out_specs=vmem,
    )(*args)


# ----------------------------------------------------------------------------
# Kernel 2: fused losses (wave residual, loss_diff, Welch coherence).
# TODO(synk): reference calls an external scipy-style coherence(); here it is
#             Welch coherence (Hann window, 50% overlap, nperseg=16, constant
#             detrend) with the whole segment/DFT pipeline folded into one
#             precomputed matrix.
# ----------------------------------------------------------------------------
def losses_kernel(scal_ref, wave_ref, dx_ref, dx2_ref,
                  dft_ref, ssum_ref, o_ref, *, n, nfreq, half):
    wave = wave_ref[...]
    dx = dx_ref[...]
    dx2 = dx2_ref[...]

    mu_x = scal_ref[0, 0]
    k_x = scal_ref[0, 1]
    mu_y = scal_ref[0, 2]
    k_y = scal_ref[0, 3]

    # --- wave-equation residual loss ---------------------------------------
    wavy_x = dx2[:n] + mu_x * dx[:n] + k_x * wave[:n]
    wavy_y = dx2[n:] + mu_y * dx[n:] + k_y * wave[n:]
    loss_wave = jnp.mean(wavy_x * wavy_x) + jnp.mean(wavy_y * wavy_y)

    # --- loss_diff ----------------------------------------------------------
    loss_diff = -((mu_x - mu_y) ** 2 + (k_x - k_y) ** 2)

    # --- Welch coherence: ONE matmul for all segments/detrend/window/DFT ----
    # F lanes [0:half]  = Re(X_s[f]) at column s*nfreq + f
    # F lanes [half:2h] = Im(X_s[f]) at column half + s*nfreq + f
    F = jnp.dot(wave, dft_ref[...], preferred_element_type=jnp.float32)
    re = F[:, :half]
    im = F[:, half:]
    xr, yr = re[:n], re[n:]
    xi, yi = im[:n], im[n:]

    a_xx = xr * xr + xi * xi
    a_yy = yr * yr + yi * yi
    a_re = xr * yr + xi * yi
    a_im = xr * yi - xi * yr
    a4 = jnp.concatenate([a_xx, a_yy, a_re, a_im], axis=0)       # (4N, half)

    # Second tiny matmul sums over segments per frequency (1/nseg folded in).
    P = jnp.dot(a4, ssum_ref[...], preferred_element_type=jnp.float32)
    pxx = P[0 * n:1 * n, :nfreq]
    pyy = P[1 * n:2 * n, :nfreq]
    pr = P[2 * n:3 * n, :nfreq]
    pim = P[3 * n:4 * n, :nfreq]

    cxy = (pr * pr + pim * pim) / (pxx * pyy + 1e-12)
    diff = 1.0 - cxy
    loss_coh = jnp.mean(diff * diff)

    o_ref[0, 0] = loss_wave
    o_ref[0, 1] = loss_diff
    o_ref[0, 2] = loss_coh


def build_welch_constants(e, nperseg=NPERSEG):
    """Fold segment selection + constant detrend + Hann window + DFT into one
    (E, 2*half) matrix, and build the 1/nseg-scaled per-frequency segment-sum
    matrix (half, 128)."""
    step = nperseg // 2
    nfreq = nperseg // 2 + 1
    nseg = (e - nperseg) // step + 1
    half = ((nseg * nfreq + 63) // 64) * 64          # lane-dense half width

    k = np.arange(nperseg)
    win = 0.5 - 0.5 * np.cos(2.0 * np.pi * k / nperseg)            # Hann
    D = np.eye(nperseg) - np.ones((nperseg, nperseg)) / nperseg    # detrend
    f = np.arange(nfreq)
    ang = 2.0 * np.pi * np.outer(k, f) / nperseg
    blk_cos = D @ np.diag(win) @ np.cos(ang)           # (nper, nfreq)
    blk_sin = D @ np.diag(win) @ (-np.sin(ang))        # (nper, nfreq)

    M = np.zeros((e, 2 * half), np.float32)
    for s in range(nseg):
        r0 = s * step
        c0 = s * nfreq
        M[r0:r0 + nperseg, c0:c0 + nfreq] = blk_cos
        M[r0:r0 + nperseg, half + c0:half + c0 + nfreq] = blk_sin

    S = np.zeros((half, 128), np.float32)
    for s in range(nseg):
        for fr in range(nfreq):
            S[s * nfreq + fr, fr] = 1.0 / nseg         # segment average
    return M, S, nfreq, half


def run_losses(scal, wave, dx, dx2, nperseg=NPERSEG):
    two_n, e = wave.shape
    n = two_n // 2
    M, S, nfreq, half = build_welch_constants(e, nperseg)

    vmem = pl.BlockSpec(memory_space=pltpu.MemorySpace.VMEM)
    smem = pl.BlockSpec(memory_space=pltpu.MemorySpace.SMEM)
    return pl.pallas_call(
        functools.partial(losses_kernel, n=n, nfreq=nfreq, half=half),
        out_shape=jax.ShapeDtypeStruct((1, 3), jnp.float32),
        in_specs=[smem, vmem, vmem, vmem, vmem, vmem],
        out_specs=smem,
    )(scal, wave, dx, dx2, jnp.asarray(M), jnp.asarray(S))


# ----------------------------------------------------------------------------
# Pure-JAX replica of the projector (per-stream BN over axis=1), used ONLY for
# the first / second order input-gradients.  Uses the padded 128-wide f32
# weights (padded gamma/beta = 0 => padded channels and their grads are 0).
# TODO(synk): torch.autograd.grad (incl. 2nd order) has no Pallas equivalent;
#             dx / dx2 use one batched jax.jvp(jax.grad(...)) on this replica.
# ----------------------------------------------------------------------------
def projector_ref_streams(phy_pair, p):
    def bn(h, g, be):
        m = jnp.mean(h, axis=1, keepdims=True)
        v = jnp.mean((h - m) ** 2, axis=1, keepdims=True)
        return g * (h - m) * jax.lax.rsqrt(v + BN_EPS) + be

    h1 = phy_pair @ p["w1_p"] + p["b1_p"]
    r1 = jax.nn.relu(bn(h1, p["g1_p"], p["be1_p"]))
    h2 = r1 @ p["w2_p"] + p["b2_p"]
    r2 = jax.nn.relu(bn(h2, p["g2_p"], p["be2_p"]))
    return r2 @ p["w3_p"] + p["b3"]


# ----------------------------------------------------------------------------
# CoherenceNet forward
# ----------------------------------------------------------------------------
@functools.partial(jax.jit, static_argnames=("wave_coeff", "diff_coeff", "coh_coeff"))
def coherence_net_forward(x, y, params,
                          wave_coeff=1e-6, diff_coeff=1e-2, coh_coeff=1.0):
    n = x.shape[0]
    # Pre-cast the only sizeable input to bf16; accumulation stays f32 in-kernel.
    xy = jnp.concatenate([x.reshape(n, -1), y.reshape(n, -1)],
                         axis=0).astype(jnp.bfloat16)               # (2N, D)

    packed = run_fused_forward(xy, params)       # (2N, 2E): [phy | wave]
    e = packed.shape[1] // 2
    phy = packed[:, :e]
    wave = packed[:, e:]

    # Batched first grad + Hessian.1 (forward-over-reverse) for both streams.
    phy_pair = phy.reshape(2, n, e)
    grad_fn = jax.grad(lambda f: jnp.sum(projector_ref_streams(f, params)))
    d1, d2 = jax.jvp(grad_fn, (phy_pair,), (jnp.ones_like(phy_pair),))
    dx = d1.reshape(2 * n, e)
    dx2 = d2.reshape(2 * n, e)

    scal = jnp.concatenate([params["mu_x"], params["k_x"],
                            params["mu_y"], params["k_y"]]).reshape(1, 4)

    # wave enters the coherence term detached in the reference; forward value
    # is identical (pallas_call is not differentiated here anyway).
    losses = run_losses(scal, wave, dx, dx2)   # [[loss_wave, loss_diff, loss_coh]]
    return (wave_coeff * losses[0, 0]
            + diff_coeff * losses[0, 1]
            + coh_coeff * losses[0, 2])


# ----------------------------------------------------------------------------
# Deterministic parameter init (shapes from the module's __init__).
# Kernel copies: bf16 weights; f32 padded biases/gamma/beta shared with the
# autodiff replica.  Padded rows/cols/gamma/beta are zero, so the real 48
# hidden channels are numerically unchanged.
# ----------------------------------------------------------------------------
def init_params(key, in_dim, embedding):
    hidden = int(embedding * 0.75)
    hp = HIDDEN_PAD
    ks = jax.random.split(key, 6)

    def lin(k, fan_in, fan_out):
        bound = 1.0 / np.sqrt(fan_in)
        kw, kb = jax.random.split(k)
        w = jax.random.uniform(kw, (fan_in, fan_out), jnp.float32, -bound, bound)
        b = jax.random.uniform(kb, (1, fan_out), jnp.float32, -bound, bound)
        return w, b

    wb, bb = lin(ks[0], in_dim, embedding)
    w1, b1 = lin(ks[1], embedding, hidden)
    w2, b2 = lin(ks[2], hidden, hidden)
    w3, b3 = lin(ks[3], hidden, embedding)
    z_x = jax.random.normal(ks[4], (1,), jnp.float32)
    z_y = jax.random.normal(ks[5], (1,), jnp.float32)

    def padc(a):
        return jnp.pad(a, ((0, 0), (0, hp - a.shape[1])))

    def padr(a):
        return jnp.pad(a, ((0, hp - a.shape[0]), (0, 0)))

    w1_p = padc(w1)
    w2_p = padr(padc(w2))
    w3_p = padr(w3)

    return dict(
        wb_k=wb.astype(jnp.bfloat16), bb=bb,
        w1_k=w1_p.astype(jnp.bfloat16), w1_p=w1_p,
        b1_p=padc(b1), g1_p=padc(jnp.ones((1, hidden), jnp.float32)),
        be1_p=jnp.zeros((1, hp), jnp.float32),
        w2_k=w2_p.astype(jnp.bfloat16), w2_p=w2_p,
        b2_p=padc(b2), g2_p=padc(jnp.ones((1, hidden), jnp.float32)),
        be2_p=jnp.zeros((1, hp), jnp.float32),
        w3_k=w3_p.astype(jnp.bfloat16), w3_p=w3_p, b3=b3,
        mu_x=z_x * 10.0, k_x=z_x * 1000.0,
        mu_y=z_y * 10.0,
        # NOTE: reference code has k_y = z_x * 1000 (uses z_x) -- reproduced.
        k_y=z_x * 1000.0,
    )


if __name__ == "__main__":
    key = jax.random.PRNGKey(0)
    kx, ky, kp = jax.random.split(key, 3)

    N, C, H, W = 8, 4, 16, 16
    EMBEDDING = 64

    x = jax.random.normal(kx, (N, C, H, W), jnp.float32)
    y = jax.random.normal(ky, (N, C, H, W), jnp.float32)
    params = init_params(kp, C * H * W, EMBEDDING)

    loss = coherence_net_forward(x, y, params)
    jax.block_until_ready(loss)
    assert jnp.isfinite(loss), "loss is not finite"
    print("KERNEL_OK")
</pallas_src>

<mosaic_0001>
module attributes {stable_mosaic.version = 11 : i64} {
  func.func @fused_forward_kernel(%arg0: memref<16x1024xbf16, #tpu.memory_space<vmem>>, %arg1: memref<1024x64xbf16, #tpu.memory_space<vmem>>, %arg2: memref<1x64xf32, #tpu.memory_space<vmem>>, %arg3: memref<64x128xbf16, #tpu.memory_space<vmem>>, %arg4: memref<1x128xf32, #tpu.memory_space<vmem>>, %arg5: memref<1x128xf32, #tpu.memory_space<vmem>>, %arg6: memref<1x128xf32, #tpu.memory_space<vmem>>, %arg7: memref<128x128xbf16, #tpu.memory_space<vmem>>, %arg8: memref<1x128xf32, #tpu.memory_space<vmem>>, %arg9: memref<1x128xf32, #tpu.memory_space<vmem>>, %arg10: memref<1x128xf32, #tpu.memory_space<vmem>>, %arg11: memref<128x64xbf16, #tpu.memory_space<vmem>>, %arg12: memref<1x64xf32, #tpu.memory_space<vmem>>, %arg13: memref<16x128xf32, #tpu.memory_space<vmem>>) attributes {dimension_semantics = [], scalar_prefetch = 0 : i64, scratch_operands = 0 : i64, tpu.core_type = #tpu.core_type<tc>} {
    %c0 = arith.constant 0 : index
    %c0_0 = arith.constant 0 : index
    %0 = vector.load %arg0[%c0, %c0_0] : memref<16x1024xbf16, #tpu.memory_space<vmem>>, vector<16x1024xbf16>
    %c0_1 = arith.constant 0 : index
    %c0_2 = arith.constant 0 : index
    %1 = vector.load %arg1[%c0_1, %c0_2] : memref<1024x64xbf16, #tpu.memory_space<vmem>>, vector<1024x64xbf16>
    %cst = arith.constant dense<0.000000e+00> : vector<16x64xf32>
    %2 = tpu.matmul %0, %1, %cst {dimension_numbers = #tpu.dot_dimension_numbers<[1], [0], [0], [1], [0, 0, 1, 1], [], []>} : vector<16x1024xbf16>, vector<1024x64xbf16>, vector<16x64xf32> -> vector<16x64xf32>
    %c0_3 = arith.constant 0 : index
    %c0_4 = arith.constant 0 : index
    %3 = vector.load %arg2[%c0_3, %c0_4] : memref<1x64xf32, #tpu.memory_space<vmem>>, vector<1x64xf32>
    %4 = vector.broadcast %3 : vector<1x64xf32> to vector<16x64xf32>
    %5 = arith.addf %2, %4 : vector<16x64xf32>
    %6 = arith.truncf %5 : vector<16x64xf32> to vector<16x64xbf16>
    %c0_5 = arith.constant 0 : index
    %c0_6 = arith.constant 0 : index
    %7 = vector.load %arg3[%c0_5, %c0_6] : memref<64x128xbf16, #tpu.memory_space<vmem>>, vector<64x128xbf16>
    %cst_7 = arith.constant dense<0.000000e+00> : vector<16x128xf32>
    %8 = tpu.matmul %6, %7, %cst_7 {dimension_numbers = #tpu.dot_dimension_numbers<[1], [0], [0], [1], [0, 0, 1, 1], [], []>} : vector<16x64xbf16>, vector<64x128xbf16>, vector<16x128xf32> -> vector<16x128xf32>
    %c0_8 = arith.constant 0 : index
    %c0_9 = arith.constant 0 : index
    %9 = vector.load %arg4[%c0_8, %c0_9] : memref<1x128xf32, #tpu.memory_space<vmem>>, vector<1x128xf32>
    %10 = vector.broadcast %9 : vector<1x128xf32> to vector<16x128xf32>
    %11 = arith.addf %8, %10 : vector<16x128xf32>
    %c0_10 = arith.constant 0 : index
    %c0_11 = arith.constant 0 : index
    %12 = vector.load %arg5[%c0_10, %c0_11] : memref<1x128xf32, #tpu.memory_space<vmem>>, vector<1x128xf32>
    %c0_12 = arith.constant 0 : index
    %c0_13 = arith.constant 0 : index
    %13 = vector.load %arg6[%c0_12, %c0_13] : memref<1x128xf32, #tpu.memory_space<vmem>>, vector<1x128xf32>
    %14 = vector.extract_strided_slice %11 {offsets = [0, 0], sizes = [8, 128], strides = [1, 1]} : vector<16x128xf32> to vector<8x128xf32>
    %cst_14 = arith.constant dense<0.000000e+00> : vector<128xf32>
    %15 = vector.multi_reduction <add>, %14, %cst_14 [0] : vector<8x128xf32> to vector<128xf32>
    %16 = vector.shape_cast %15 : vector<128xf32> to vector<1x128xf32>
    %cst_15 = arith.constant 8.000000e+00 : f32
    %17 = vector.broadcast %cst_15 : f32 to vector<1x128xf32>
    %18 = arith.divf %16, %17 : vector<1x128xf32>
    %19 = vector.broadcast %18 : vector<1x128xf32> to vector<8x128xf32>
    %20 = arith.subf %14, %19 : vector<8x128xf32>
    %21 = arith.mulf %20, %20 : vector<8x128xf32>
    %cst_16 = arith.constant dense<0.000000e+00> : vector<128xf32>
    %22 = vector.multi_reduction <add>, %21, %cst_16 [0] : vector<8x128xf32> to vector<128xf32>
    %23 = vector.shape_cast %22 : vector<128xf32> to vector<1x128xf32>
    %cst_17 = arith.constant 8.000000e+00 : f32
    %24 = vector.broadcast %cst_17 : f32 to vector<1x128xf32>
    %25 = arith.divf %23, %24 : vector<1x128xf32>
    %26 = vector.broadcast %18 : vector<1x128xf32> to vector<8x128xf32>
    %27 = arith.subf %14, %26 : vector<8x128xf32>
    %28 = vector.broadcast %12 : vector<1x128xf32> to vector<8x128xf32>
    %29 = arith.mulf %28, %27 : vector<8x128xf32>
    %cst_18 = arith.constant 9.99999974E-6 : f32
    %30 = vector.broadcast %cst_18 : f32 to vector<1x128xf32>
    %31 = arith.addf %25, %30 : vector<1x128xf32>
    %32 = math.rsqrt %31 : vector<1x128xf32>
    %33 = vector.broadcast %32 : vector<1x128xf32> to vector<8x128xf32>
    %34 = arith.mulf %29, %33 : vector<8x128xf32>
    %35 = vector.broadcast %13 : vector<1x128xf32> to vector<8x128xf32>
    %36 = arith.addf %34, %35 : vector<8x128xf32>
    %37 = vector.extract_strided_slice %11 {offsets = [8, 0], sizes = [8, 128], strides = [1, 1]} : vector<16x128xf32> to vector<8x128xf32>
    %cst_19 = arith.constant dense<0.000000e+00> : vector<128xf32>
    %38 = vector.multi_reduction <add>, %37, %cst_19 [0] : vector<8x128xf32> to vector<128xf32>
    %39 = vector.shape_cast %38 : vector<128xf32> to vector<1x128xf32>
    %cst_20 = arith.constant 8.000000e+00 : f32
    %40 = vector.broadcast %cst_20 : f32 to vector<1x128xf32>
    %41 = arith.divf %39, %40 : vector<1x128xf32>
    %42 = vector.broadcast %41 : vector<1x128xf32> to vector<8x128xf32>
    %43 = arith.subf %37, %42 : vector<8x128xf32>
    %44 = arith.mulf %43, %43 : vector<8x128xf32>
    %cst_21 = arith.constant dense<0.000000e+00> : vector<128xf32>
    %45 = vector.multi_reduction <add>, %44, %cst_21 [0] : vector<8x128xf32> to vector<128xf32>
    %46 = vector.shape_cast %45 : vector<128xf32> to vector<1x128xf32>
    %cst_22 = arith.constant 8.000000e+00 : f32
    %47 = vector.broadcast %cst_22 : f32 to vector<1x128xf32>
    %48 = arith.divf %46, %47 : vector<1x128xf32>
    %49 = vector.broadcast %41 : vector<1x128xf32> to vector<8x128xf32>
    %50 = arith.subf %37, %49 : vector<8x128xf32>
    %51 = vector.broadcast %12 : vector<1x128xf32> to vector<8x128xf32>
    %52 = arith.mulf %51, %50 : vector<8x128xf32>
    %cst_23 = arith.constant 9.99999974E-6 : f32
    %53 = vector.broadcast %cst_23 : f32 to vector<1x128xf32>
    %54 = arith.addf %48, %53 : vector<1x128xf32>
    %55 = math.rsqrt %54 : vector<1x128xf32>
    %56 = vector.broadcast %55 : vector<1x128xf32> to vector<8x128xf32>
    %57 = arith.mulf %52, %56 : vector<8x128xf32>
    %58 = vector.broadcast %13 : vector<1x128xf32> to vector<8x128xf32>
    %59 = arith.addf %57, %58 : vector<8x128xf32>
    %60 = tpu.concatenate %36, %59 in 0 : vector<8x128xf32>, vector<8x128xf32> -> vector<16x128xf32>
    %cst_24 = arith.constant 0.000000e+00 : f32
    %61 = vector.broadcast %cst_24 : f32 to vector<16x128xf32>
    %62 = arith.maximumf %60, %61 : vector<16x128xf32>
    %63 = arith.truncf %62 : vector<16x128xf32> to vector<16x128xbf16>
    %c0_25 = arith.constant 0 : index
    %c0_26 = arith.constant 0 : index
    %64 = vector.load %arg7[%c0_25, %c0_26] : memref<128x128xbf16, #tpu.memory_space<vmem>>, vector<128x128xbf16>
    %cst_27 = arith.constant dense<0.000000e+00> : vector<16x128xf32>
    %65 = tpu.matmul %63, %64, %cst_27 {dimension_numbers = #tpu.dot_dimension_numbers<[1], [0], [0], [1], [0, 0, 1, 1], [], []>} : vector<16x128xbf16>, vector<128x128xbf16>, vector<16x128xf32> -> vector<16x128xf32>
    %c0_28 = arith.constant 0 : index
    %c0_29 = arith.constant 0 : index
    %66 = vector.load %arg8[%c0_28, %c0_29] : memref<1x128xf32, #tpu.memory_space<vmem>>, vector<1x128xf32>
    %67 = vector.broadcast %66 : vector<1x128xf32> to vector<16x128xf32>
    %68 = arith.addf %65, %67 : vector<16x128xf32>
    %c0_30 = arith.constant 0 : index
    %c0_31 = arith.constant 0 : index
    %69 = vector.load %arg9[%c0_30, %c0_31] : memref<1x128xf32, #tpu.memory_space<vmem>>, vector<1x128xf32>
    %c0_32 = arith.constant 0 : index
    %c0_33 = arith.constant 0 : index
    %70 = vector.load %arg10[%c0_32, %c0_33] : memref<1x128xf32, #tpu.memory_space<vmem>>, vector<1x128xf32>
    %71 = vector.extract_strided_slice %68 {offsets = [0, 0], sizes = [8, 128], strides = [1, 1]} : vector<16x128xf32> to vector<8x128xf32>
    %cst_34 = arith.constant dense<0.000000e+00> : vector<128xf32>
    %72 = vector.multi_reduction <add>, %71, %cst_34 [0] : vector<8x128xf32> to vector<128xf32>
    %73 = vector.shape_cast %72 : vector<128xf32> to vector<1x128xf32>
    %cst_35 = arith.constant 8.000000e+00 : f32
    %74 = vector.broadcast %cst_35 : f32 to vector<1x128xf32>
    %75 = arith.divf %73, %74 : vector<1x128xf32>
    %76 = vector.broadcast %75 : vector<1x128xf32> to vector<8x128xf32>
    %77 = arith.subf %71, %76 : vector<8x128xf32>
    %78 = arith.mulf %77, %77 : vector<8x128xf32>
    %cst_36 = arith.constant dense<0.000000e+00> : vector<128xf32>
    %79 = vector.multi_reduction <add>, %78, %cst_36 [0] : vector<8x128xf32> to vector<128xf32>
    %80 = vector.shape_cast %79 : vector<128xf32> to vector<1x128xf32>
    %cst_37 = arith.constant 8.000000e+00 : f32
    %81 = vector.broadcast %cst_37 : f32 to vector<1x128xf32>
    %82 = arith.divf %80, %81 : vector<1x128xf32>
    %83 = vector.broadcast %75 : vector<1x128xf32> to vector<8x128xf32>
    %84 = arith.subf %71, %83 : vector<8x128xf32>
    %85 = vector.broadcast %69 : vector<1x128xf32> to vector<8x128xf32>
    %86 = arith.mulf %85, %84 : vector<8x128xf32>
    %cst_38 = arith.constant 9.99999974E-6 : f32
    %87 = vector.broadcast %cst_38 : f32 to vector<1x128xf32>
    %88 = arith.addf %82, %87 : vector<1x128xf32>
    %89 = math.rsqrt %88 : vector<1x128xf32>
    %90 = vector.broadcast %89 : vector<1x128xf32> to vector<8x128xf32>
    %91 = arith.mulf %86, %90 : vector<8x128xf32>
    %92 = vector.broadcast %70 : vector<1x128xf32> to vector<8x128xf32>
    %93 = arith.addf %91, %92 : vector<8x128xf32>
    %94 = vector.extract_strided_slice %68 {offsets = [8, 0], sizes = [8, 128], strides = [1, 1]} : vector<16x128xf32> to vector<8x128xf32>
    %cst_39 = arith.constant dense<0.000000e+00> : vector<128xf32>
    %95 = vector.multi_reduction <add>, %94, %cst_39 [0] : vector<8x128xf32> to vector<128xf32>
    %96 = vector.shape_cast %95 : vector<128xf32> to vector<1x128xf32>
    %cst_40 = arith.constant 8.000000e+00 : f32
    %97 = vector.broadcast %cst_40 : f32 to vector<1x128xf32>
    %98 = arith.divf %96, %97 : vector<1x128xf32>
    %99 = vector.broadcast %98 : vector<1x128xf32> to vector<8x128xf32>
    %100 = arith.subf %94, %99 : vector<8x128xf32>
    %101 = arith.mulf %100, %100 : vector<8x128xf32>
    %cst_41 = arith.constant dense<0.000000e+00> : vector<128xf32>
    %102 = vector.multi_reduction <add>, %101, %cst_41 [0] : vector<8x128xf32> to vector<128xf32>
    %103 = vector.shape_cast %102 : vector<128xf32> to vector<1x128xf32>
    %cst_42 = arith.constant 8.000000e+00 : f32
    %104 = vector.broadcast %cst_42 : f32 to vector<1x128xf32>
    %105 = arith.divf %103, %104 : vector<1x128xf32>
    %106 = vector.broadcast %98 : vector<1x128xf32> to vector<8x128xf32>
    %107 = arith.subf %94, %106 : vector<8x128xf32>
    %108 = vector.broadcast %69 : vector<1x128xf32> to vector<8x128xf32>
    %109 = arith.mulf %108, %107 : vector<8x128xf32>
    %cst_43 = arith.constant 9.99999974E-6 : f32
    %110 = vector.broadcast %cst_43 : f32 to vector<1x128xf32>
    %111 = arith.addf %105, %110 : vector<1x128xf32>
    %112 = math.rsqrt %111 : vector<1x128xf32>
    %113 = vector.broadcast %112 : vector<1x128xf32> to vector<8x128xf32>
    %114 = arith.mulf %109, %113 : vector<8x128xf32>
    %115 = vector.broadcast %70 : vector<1x128xf32> to vector<8x128xf32>
    %116 = arith.addf %114, %115 : vector<8x128xf32>
    %117 = tpu.concatenate %93, %116 in 0 : vector<8x128xf32>, vector<8x128xf32> -> vector<16x128xf32>
    %cst_44 = arith.constant 0.000000e+00 : f32
    %118 = vector.broadcast %cst_44 : f32 to vector<16x128xf32>
    %119 = arith.maximumf %117, %118 : vector<16x128xf32>
    %120 = arith.truncf %119 : vector<16x128xf32> to vector<16x128xbf16>
    %c0_45 = arith.constant 0 : index
    %c0_46 = arith.constant 0 : index
    %121 = vector.load %arg11[%c0_45, %c0_46] : memref<128x64xbf16, #tpu.memory_space<vmem>>, vector<128x64xbf16>
    %cst_47 = arith.constant dense<0.000000e+00> : vector<16x64xf32>
    %122 = tpu.matmul %120, %121, %cst_47 {dimension_numbers = #tpu.dot_dimension_numbers<[1], [0], [0], [1], [0, 0, 1, 1], [], []>} : vector<16x128xbf16>, vector<128x64xbf16>, vector<16x64xf32> -> vector<16x64xf32>
    %c0_48 = arith.constant 0 : index
    %c0_49 = arith.constant 0 : index
    %123 = vector.load %arg12[%c0_48, %c0_49] : memref<1x64xf32, #tpu.memory_space<vmem>>, vector<1x64xf32>
    %124 = vector.broadcast %123 : vector<1x64xf32> to vector<16x64xf32>
    %125 = arith.addf %122, %124 : vector<16x64xf32>
    %126 = tpu.concatenate %5, %125 in 1 : vector<16x64xf32>, vector<16x64xf32> -> vector<16x128xf32>
    %c0_50 = arith.constant 0 : index
    %c0_51 = arith.constant 0 : index
    %127 = vector.load %arg13[%c0_50, %c0_51] : memref<16x128xf32, #tpu.memory_space<vmem>>, vector<16x128xf32>
    tpu.vector_store %arg13[%c0_50, %c0_51], %126 {strides = array<i32>} : memref<16x128xf32, #tpu.memory_space<vmem>>, vector<16x128xf32>,
    return
  }
}

module attributes {stable_mosaic.version = 11 : i64} {
  func.func @losses_kernel(%arg0: memref<1x4xf32, #tpu.memory_space<smem>>, %arg1: memref<16x64xf32, #tpu.memory_space<vmem>>, %arg2: memref<16x64xf32, #tpu.memory_space<vmem>>, %arg3: memref<16x64xf32, #tpu.memory_space<vmem>>, %arg4: memref<64x128xf32, #tpu.memory_space<vmem>>, %arg5: memref<64x128xf32, #tpu.memory_space<vmem>>, %arg6: memref<1x3xf32, #tpu.memory_space<smem>>) attributes {dimension_semantics = [], scalar_prefetch = 0 : i64, scratch_operands = 0 : i64, tpu.core_type = #tpu.core_type<tc>} {
    %c0 = arith.constant 0 : index
    %c0_0 = arith.constant 0 : index
    %0 = vector.load %arg1[%c0, %c0_0] : memref<16x64xf32, #tpu.memory_space<vmem>>, vector<16x64xf32>
    %c0_1 = arith.constant 0 : index
    %c0_2 = arith.constant 0 : index
    %1 = vector.load %arg2[%c0_1, %c0_2] : memref<16x64xf32, #tpu.memory_space<vmem>>, vector<16x64xf32>
    %c0_3 = arith.constant 0 : index
    %c0_4 = arith.constant 0 : index
    %2 = vector.load %arg3[%c0_3, %c0_4] : memref<16x64xf32, #tpu.memory_space<vmem>>, vector<16x64xf32>
    %c0_5 = arith.constant 0 : index
    %c0_6 = arith.constant 0 : index
    %3 = memref.load %arg0[%c0_5, %c0_6] : memref<1x4xf32, #tpu.memory_space<smem>>
    %c0_7 = arith.constant 0 : index
    %c1 = arith.constant 1 : index
    %4 = memref.load %arg0[%c0_7, %c1] : memref<1x4xf32, #tpu.memory_space<smem>>
    %c0_8 = arith.constant 0 : index
    %c2 = arith.constant 2 : index
    %5 = memref.load %arg0[%c0_8, %c2] : memref<1x4xf32, #tpu.memory_space<smem>>
    %c0_9 = arith.constant 0 : index
    %c3 = arith.constant 3 : index
    %6 = memref.load %arg0[%c0_9, %c3] : memref<1x4xf32, #tpu.memory_space<smem>>
    %7 = vector.extract_strided_slice %2 {offsets = [0, 0], sizes = [8, 64], strides = [1, 1]} : vector<16x64xf32> to vector<8x64xf32>
    %8 = vector.extract_strided_slice %1 {offsets = [0, 0], sizes = [8, 64], strides = [1, 1]} : vector<16x64xf32> to vector<8x64xf32>
    %9 = vector.broadcast %3 : f32 to vector<8x64xf32>
    %10 = arith.mulf %9, %8 : vector<8x64xf32>
    %11 = arith.addf %7, %10 : vector<8x64xf32>
    %12 = vector.extract_strided_slice %0 {offsets = [0, 0], sizes = [8, 64], strides = [1, 1]} : vector<16x64xf32> to vector<8x64xf32>
    %13 = vector.broadcast %4 : f32 to vector<8x64xf32>
    %14 = arith.mulf %13, %12 : vector<8x64xf32>
    %15 = arith.addf %11, %14 : vector<8x64xf32>
    %16 = vector.extract_strided_slice %2 {offsets = [8, 0], sizes = [8, 64], strides = [1, 1]} : vector<16x64xf32> to vector<8x64xf32>
    %17 = vector.extract_strided_slice %1 {offsets = [8, 0], sizes = [8, 64], strides = [1, 1]} : vector<16x64xf32> to vector<8x64xf32>
    %18 = vector.broadcast %5 : f32 to vector<8x64xf32>
    %19 = arith.mulf %18, %17 : vector<8x64xf32>
    %20 = arith.addf %16, %19 : vector<8x64xf32>
    %21 = vector.extract_strided_slice %0 {offsets = [8, 0], sizes = [8, 64], strides = [1, 1]} : vector<16x64xf32> to vector<8x64xf32>
    %22 = vector.broadcast %6 : f32 to vector<8x64xf32>
    %23 = arith.mulf %22, %21 : vector<8x64xf32>
    %24 = arith.addf %20, %23 : vector<8x64xf32>
    %25 = arith.mulf %15, %15 : vector<8x64xf32>
    %26 = vector.shape_cast %25 : vector<8x64xf32> to vector<1x8x64xf32>
    %cst = arith.constant dense<0.000000e+00> : vector<1xf32>
    %27 = vector.multi_reduction <add>, %26, %cst [1, 2] : vector<1x8x64xf32> to vector<1xf32>
    %28 = vector.shape_cast %27 : vector<1xf32> to vector<1x1x1xf32>
    %29 = vector.extract %28[0, 0, 0] : f32 from vector<1x1x1xf32>
    %cst_10 = arith.constant 5.120000e+02 : f32
    %30 = arith.divf %29, %cst_10 : f32
    %31 = arith.mulf %24, %24 : vector<8x64xf32>
    %32 = vector.shape_cast %31 : vector<8x64xf32> to vector<1x8x64xf32>
    %cst_11 = arith.constant dense<0.000000e+00> : vector<1xf32>
    %33 = vector.multi_reduction <add>, %32, %cst_11 [1, 2] : vector<1x8x64xf32> to vector<1xf32>
    %34 = vector.shape_cast %33 : vector<1xf32> to vector<1x1x1xf32>
    %35 = vector.extract %34[0, 0, 0] : f32 from vector<1x1x1xf32>
    %cst_12 = arith.constant 5.120000e+02 : f32
    %36 = arith.divf %35, %cst_12 : f32
    %37 = arith.addf %30, %36 : f32
    %38 = arith.subf %3, %5 : f32
    %39 = arith.mulf %38, %38 : f32
    %40 = arith.subf %4, %6 : f32
    %41 = arith.mulf %40, %40 : f32
    %42 = arith.addf %39, %41 : f32
    %cst_13 = arith.constant 0.000000e+00 : f32
    %43 = arith.subf %cst_13, %42 : f32
    %c0_14 = arith.constant 0 : index
    %c0_15 = arith.constant 0 : index
    %44 = vector.load %arg4[%c0_14, %c0_15] : memref<64x128xf32, #tpu.memory_space<vmem>>, vector<64x128xf32>
    %cst_16 = arith.constant dense<0.000000e+00> : vector<16x128xf32>
    %45 = tpu.matmul %0, %44, %cst_16 {dimension_numbers = #tpu.dot_dimension_numbers<[1], [0], [0], [1], [0, 0, 1, 1], [], []>} : vector<16x64xf32>, vector<64x128xf32>, vector<16x128xf32> -> vector<16x128xf32>
    %46 = vector.extract_strided_slice %45 {offsets = [0, 0], sizes = [16, 64], strides = [1, 1]} : vector<16x128xf32> to vector<16x64xf32>
    %47 = vector.extract_strided_slice %45 {offsets = [0, 64], sizes = [16, 64], strides = [1, 1]} : vector<16x128xf32> to vector<16x64xf32>
    %48 = vector.extract_strided_slice %46 {offsets = [0, 0], sizes = [8, 64], strides = [1, 1]} : vector<16x64xf32> to vector<8x64xf32>
    %49 = vector.extract_strided_slice %46 {offsets = [8, 0], sizes = [8, 64], strides = [1, 1]} : vector<16x64xf32> to vector<8x64xf32>
    %50 = vector.extract_strided_slice %47 {offsets = [0, 0], sizes = [8, 64], strides = [1, 1]} : vector<16x64xf32> to vector<8x64xf32>
    %51 = vector.extract_strided_slice %47 {offsets = [8, 0], sizes = [8, 64], strides = [1, 1]} : vector<16x64xf32> to vector<8x64xf32>
    %52 = arith.mulf %48, %48 : vector<8x64xf32>
    %53 = arith.mulf %50, %50 : vector<8x64xf32>
    %54 = arith.addf %52, %53 : vector<8x64xf32>
    %55 = arith.mulf %49, %49 : vector<8x64xf32>
    %56 = arith.mulf %51, %51 : vector<8x64xf32>
    %57 = arith.addf %55, %56 : vector<8x64xf32>
    %58 = arith.mulf %48, %49 : vector<8x64xf32>
    %59 = arith.mulf %50, %51 : vector<8x64xf32>
    %60 = arith.addf %58, %59 : vector<8x64xf32>
    %61 = arith.mulf %48, %51 : vector<8x64xf32>
    %62 = arith.mulf %50, %49 : vector<8x64xf32>
    %63 = arith.subf %61, %62 : vector<8x64xf32>
    %64 = tpu.concatenate %54, %57, %60, %63 in 0 : vector<8x64xf32>, vector<8x64xf32>, vector<8x64xf32>, vector<8x64xf32> -> vector<32x64xf32>
    %c0_17 = arith.constant 0 : index
    %c0_18 = arith.constant 0 : index
    %65 = vector.load %arg5[%c0_17, %c0_18] : memref<64x128xf32, #tpu.memory_space<vmem>>, vector<64x128xf32>
    %cst_19 = arith.constant dense<0.000000e+00> : vector<32x128xf32>
    %66 = tpu.matmul %64, %65, %cst_19 {dimension_numbers = #tpu.dot_dimension_numbers<[1], [0], [0], [1], [0, 0, 1, 1], [], []>} : vector<32x64xf32>, vector<64x128xf32>, vector<32x128xf32> -> vector<32x128xf32>
    %67 = vector.extract_strided_slice %66 {offsets = [0, 0], sizes = [8, 9], strides = [1, 1]} : vector<32x128xf32> to vector<8x9xf32>
    %68 = vector.extract_strided_slice %66 {offsets = [8, 0], sizes = [8, 9], strides = [1, 1]} : vector<32x128xf32> to vector<8x9xf32>
    %69 = vector.extract_strided_slice %66 {offsets = [16, 0], sizes = [8, 9], strides = [1, 1]} : vector<32x128xf32> to vector<8x9xf32>
    %70 = vector.extract_strided_slice %66 {offsets = [24, 0], sizes = [8, 9], strides = [1, 1]} : vector<32x128xf32> to vector<8x9xf32>
    %71 = arith.mulf %69, %69 : vector<8x9xf32>
    %72 = arith.mulf %70, %70 : vector<8x9xf32>
    %73 = arith.addf %71, %72 : vector<8x9xf32>
    %74 = arith.mulf %67, %68 : vector<8x9xf32>
    %cst_20 = arith.constant 9.99999996E-13 : f32
    %75 = vector.broadcast %cst_20 : f32 to vector<8x9xf32>
    %76 = arith.addf %74, %75 : vector<8x9xf32>
    %77 = arith.divf %73, %76 : vector<8x9xf32>
    %cst_21 = arith.constant 1.000000e+00 : f32
    %78 = vector.broadcast %cst_21 : f32 to vector<8x9xf32>
    %79 = arith.subf %78, %77 : vector<8x9xf32>
    %80 = arith.mulf %79, %79 : vector<8x9xf32>
    %81 = vector.shape_cast %80 : vector<8x9xf32> to vector<1x8x9xf32>
    %cst_22 = arith.constant dense<0.000000e+00> : vector<1xf32>
    %82 = vector.multi_reduction <add>, %81, %cst_22 [1, 2] : vector<1x8x9xf32> to vector<1xf32>
    %83 = vector.shape_cast %82 : vector<1xf32> to vector<1x1x1xf32>
    %84 = vector.extract %83[0, 0, 0] : f32 from vector<1x1x1xf32>
    %cst_23 = arith.constant 7.200000e+01 : f32
    %85 = arith.divf %84, %cst_23 : f32
    %c0_24 = arith.constant 0 : index
    %c0_25 = arith.constant 0 : index
    %86 = memref.load %arg6[%c0_24, %c0_25] : memref<1x3xf32, #tpu.memory_space<smem>>
    memref.store %37, %arg6[%c0_24, %c0_25] : memref<1x3xf32, #tpu.memory_space<smem>>
    %c0_26 = arith.constant 0 : index
    %c1_27 = arith.constant 1 : index
    %87 = memref.load %arg6[%c0_26, %c1_27] : memref<1x3xf32, #tpu.memory_space<smem>>
    memref.store %43, %arg6[%c0_26, %c1_27] : memref<1x3xf32, #tpu.memory_space<smem>>
    %c0_28 = arith.constant 0 : index
    %c2_29 = arith.constant 2 : index
    %88 = memref.load %arg6[%c0_28, %c2_29] : memref<1x3xf32, #tpu.memory_space<smem>>
    memref.store %85, %arg6[%c0_28, %c2_29] : memref<1x3xf32, #tpu.memory_space<smem>>
    return
  }
}

</mosaic_0001>

<bundles_post_ra>
// kernel: coherence_net_forward.2
= control target key start
LH: loop header
LB: loop body
LE: loop exit
PB: predicated region body
PF: predicated region fallthrough
CT: control target
= control target key end

     0   :  { %vm758_vm0 = vcmask 523264   ;;  %s2009_s1 = inlined_call_operand.vmem [shape: bf16[1024,64], index: 1, kind: input, shape index: {}]   ;;  %s2010_s2 = inlined_call_operand.vmem [shape: f32[1,64], index: 2, kind: input, shape index: {}]   ;;  %s2011_s0 = inlined_call_operand.vmem [shape: bf16[16,1024], index: 0, kind: input, shape index: {}]   ;;  %s2012_s4 = inlined_call_operand.vmem [shape: f32[1,128], index: 4, kind: input, shape index: {}]   ;;  %s2013_s5 = inlined_call_operand.vmem [shape: f32[1,128], index: 5, kind: input, shape index: {}]   ;;  %s2014_s3 = inlined_call_operand.vmem [shape: bf16[64,128], index: 3, kind: input, shape index: {}]   ;;  %s2015_s6 = inlined_call_operand.vmem [shape: f32[1,128], index: 6, kind: input, shape index: {}]   ;;  %s2016_s8 = inlined_call_operand.vmem [shape: f32[1,128], index: 8, kind: input, shape index: {}]   ;;  %s2017_s9 = inlined_call_operand.vmem [shape: f32[1,128], index: 9, kind: input, shape index: {}]   ;;  %s2018_s7 = inlined_call_operand.vmem [shape: bf16[128,128], index: 7, kind: input, shape index: {}]   ;;  %s2019_s10 = inlined_call_operand.vmem [shape: f32[1,128], index: 10, kind: input, shape index: {}]   ;;  %s2020_s12 = inlined_call_operand.vmem [shape: f32[1,64], index: 12, kind: input, shape index: {}]   ;;  %s2021_s11 = inlined_call_operand.vmem [shape: bf16[128,64], index: 11, kind: input, shape index: {}]   ;;  %s2022_s13 = inlined_call_operand.vmem [shape: f32[16,128], index: 13, kind: output, shape index: {}]  }
   0x1   :  { %v1489_v0 = vld [vmem:[%s2009_s1 + $0x38] sm:$0xff]  ;;  %v1488_v4 = vld [vmem:[%s2009_s1 + $0x30] sm:$0xff]  ;;  %v1487_v8 = vld [vmem:[%s2009_s1 + $0x28] sm:$0xff] }
   0x2   :  { %v1497_v1 = vld [vmem:[%s2009_s1 + $0x78] sm:$0xff]  ;;  %609 = vmatpush.bf16.msra.mxu0 %v1489_v0  ;;  %v1496_v5 = vld [vmem:[%s2009_s1 + $0x70] sm:$0xff]  ;;  %v1495_v9 = vld [vmem:[%s2009_s1 + $0x68] sm:$0xff] }
   0x3   :  { %v1505_v2 = vld [vmem:[%s2009_s1 + $0xb8] sm:$0xff]  ;;  %623 = vmatpush.bf16.msra.mxu1 %v1497_v1  ;;  %v1504_v6 = vld [vmem:[%s2009_s1 + $0xb0] sm:$0xff]  ;;  %v1503_v10 = vld [vmem:[%s2009_s1 + $0xa8] sm:$0xff] }
   0x4   :  { %v1513_v3 = vld [vmem:[%s2009_s1 + $0xf8] sm:$0xff]  ;;  %637 = vmatpush.bf16.msra.mxu2 %v1505_v2  ;;  %v1512_v7 = vld [vmem:[%s2009_s1 + $0xf0] sm:$0xff]  ;;  %v1511_v11 = vld [vmem:[%s2009_s1 + $0xe8] sm:$0xff] }
   0x5   :  { %651 = vmatpush.bf16.msra.mxu3 %v1513_v3  ;;  %v1486_v12 = vld [vmem:[%s2009_s1 + $0x20] sm:$0xff]  ;;  %v1485_v16 = vld [vmem:[%s2009_s1 + $0x18] sm:$0xff]  ;;  %v1484_v20 = vld [vmem:[%s2009_s1 + $0x10] sm:$0xff] }
   0x6   :  { %610 = vmatpush.bf16.msra.mxu0 %v1488_v4  ;;  %v1494_v13 = vld [vmem:[%s2009_s1 + $0x60] sm:$0xff]  ;;  %v1493_v17 = vld [vmem:[%s2009_s1 + $0x58] sm:$0xff]  ;;  %v1492_v21 = vld [vmem:[%s2009_s1 + $0x50] sm:$0xff] }
   0x7   :  { %624 = vmatpush.bf16.msra.mxu1 %v1496_v5  ;;  %v1502_v14 = vld [vmem:[%s2009_s1 + $0xa0] sm:$0xff]  ;;  %v1501_v18 = vld [vmem:[%s2009_s1 + $0x98] sm:$0xff]  ;;  %v1500_v22 = vld [vmem:[%s2009_s1 + $0x90] sm:$0xff] }
   0x8   :  { %638 = vmatpush.bf16.msra.mxu2 %v1504_v6  ;;  %v1510_v15 = vld [vmem:[%s2009_s1 + $0xe0] sm:$0xff]  ;;  %v1509_v19 = vld [vmem:[%s2009_s1 + $0xd8] sm:$0xff]  ;;  %v1508_v23 = vld [vmem:[%s2009_s1 + $0xd0] sm:$0xff] }
   0x9   :  { %652 = vmatpush.bf16.msra.mxu3 %v1512_v7  ;;  %v1483_v24 = vld [vmem:[%s2009_s1 + $0x8] sm:$0xff]  ;;  %v1482_v28 = vld [vmem:[%s2009_s1] sm:$0xff]  ;;  %v1521_v32 = vld [vmem:[%s2009_s1 + $0x138] sm:$0xff] }
   0xa   :  { %611 = vmatpush.bf16.msra.mxu0 %v1487_v8  ;;  %v1491_v25 = vld [vmem:[%s2009_s1 + $0x48] sm:$0xff]  ;;  %v1490_v29 = vld [vmem:[%s2009_s1 + $0x40] sm:$0xff]  ;;  %v1529_v33 = vld [vmem:[%s2009_s1 + $0x178] sm:$0xff] }
   0xb   :  { %625 = vmatpush.bf16.msra.mxu1 %v1495_v9  ;;  %v1499_v26 = vld [vmem:[%s2009_s1 + $0x88] sm:$0xff]  ;;  %v1498_v30 = vld [vmem:[%s2009_s1 + $0x80] sm:$0xff]  ;;  %v1537_v42 = vld [vmem:[%s2009_s1 + $0x1b8] sm:$0xff] }
   0xc   :  { %639 = vmatpush.bf16.msra.mxu2 %v1503_v10  ;;  %v1507_v27 = vld [vmem:[%s2009_s1 + $0xc8] sm:$0xff]  ;;  %v1506_v31 = vld [vmem:[%s2009_s1 + $0xc0] sm:$0xff]  ;;  %v1545_v43 = vld [vmem:[%s2009_s1 + $0x1f8] sm:$0xff] }
   0xd   :  { %653 = vmatpush.bf16.msra.mxu3 %v1511_v11  ;;  %v1115_v34 = vld [vmem:[%s2011_s0 + $0x8] sm:$0xf]  ;;  %v1107_v36 = vld [vmem:[%s2011_s0] sm:$0xf]  ;;  %v1475_v38 = vld [vmem:[%s2011_s0 + $0xc] sm:$0xf] }
   0xe   :  { %612 = vmatpush.bf16.msra.mxu0 %v1486_v12  ;;  %v1479_v35 = vld [vmem:[%s2011_s0 + $0x24] sm:$0xf0]  ;;  %v1478_v37 = vld [vmem:[%s2011_s0 + $0x1c] sm:$0xf0]  ;;  %v1117_v39 = vld [vmem:[%s2011_s0 + $0x28] sm:$0xf0] }
   0xf   :  { %626 = vmatpush.bf16.msra.mxu1 %v1494_v13  ;;  %v1474_v40 = vld [vmem:[%s2011_s0 + $0x4] sm:$0xf]  ;;  %v1116_v44 = vor.u32 %v1479_v35, %v1115_v34  ;;  %v1108_v45 = vor.u32 %v1478_v37, %v1107_v36  ;;  %v1120_v46 = vor.u32 %v1475_v38, %v1117_v39  ;;  %v1520_v48 = vld [vmem:[%s2009_s1 + $0x130] sm:$0xff]  ;;  %v1519_v52 = vld [vmem:[%s2009_s1 + $0x128] sm:$0xff] }
  0x10   :  { %640 = vmatpush.bf16.msra.mxu2 %v1502_v14  ;;  %v1109_v41 = vld [vmem:[%s2011_s0 + $0x20] sm:$0xf0]  ;;  %v1528_v49 = vld [vmem:[%s2009_s1 + $0x170] sm:$0xff]  ;;  %v1527_v53 = vld [vmem:[%s2009_s1 + $0x168] sm:$0xff] }
  0x11   :  { %654 = vmatpush.bf16.msra.mxu3 %v1510_v15  ;;  %v1112_v47 = vor.u32 %v1474_v40, %v1109_v41  ;;  %v1536_v50 = vld [vmem:[%s2009_s1 + $0x1b0] sm:$0xff]  ;;  %v1535_v54 = vld [vmem:[%s2009_s1 + $0x1a8] sm:$0xff]  ;;  %v1518_v56 = vld [vmem:[%s2009_s1 + $0x120] sm:$0xff] }
  0x12   :  { %613 = vmatpush.bf16.msra.mxu0 %v1485_v16  ;;  %v1544_v51 = vld [vmem:[%s2009_s1 + $0x1f0] sm:$0xff]  ;;  %v1543_v55 = vld [vmem:[%s2009_s1 + $0x1e8] sm:$0xff]  ;;  %v1526_v57 = vld [vmem:[%s2009_s1 + $0x160] sm:$0xff] }
  0x13   :  { %627 = vmatpush.bf16.msra.mxu1 %v1493_v17  ;;  %v1534_v58 = vld [vmem:[%s2009_s1 + $0x1a0] sm:$0xff]  ;;  %v1517_v60 = vld [vmem:[%s2009_s1 + $0x118] sm:$0xff]  ;;  %v1516_v0 = vld [vmem:[%s2009_s1 + $0x110] sm:$0xff] }
  0x14   :  { %641 = vmatpush.bf16.msra.mxu2 %v1501_v18  ;;  %v1542_v59 = vld [vmem:[%s2009_s1 + $0x1e0] sm:$0xff]  ;;  %v1525_v61 = vld [vmem:[%s2009_s1 + $0x158] sm:$0xff]  ;;  %v1524_v1 = vld [vmem:[%s2009_s1 + $0x150] sm:$0xff] }
  0x15   :  { %655 = vmatpush.bf16.msra.mxu3 %v1509_v19  ;;  %v1533_v62 = vld [vmem:[%s2009_s1 + $0x198] sm:$0xff]  ;;  %v1532_v2 = vld [vmem:[%s2009_s1 + $0x190] sm:$0xff]  ;;  %v1515_v4 = vld [vmem:[%s2009_s1 + $0x108] sm:$0xff] }
  0x16   :  { %614 = vmatpush.bf16.msra.mxu0 %v1484_v20  ;;  %v1541_v63 = vld [vmem:[%s2009_s1 + $0x1d8] sm:$0xff]  ;;  %v1540_v3 = vld [vmem:[%s2009_s1 + $0x1d0] sm:$0xff]  ;;  %v1523_v5 = vld [vmem:[%s2009_s1 + $0x148] sm:$0xff] }
  0x17   :  { %628 = vmatpush.bf16.msra.mxu1 %v1492_v21  ;;  %v1531_v6 = vld [vmem:[%s2009_s1 + $0x188] sm:$0xff]  ;;  %v1514_v8 = vld [vmem:[%s2009_s1 + $0x100] sm:$0xff]  ;;  %v1123_v12 = vld [vmem:[%s2011_s0 + $0x10] sm:$0xf] }
  0x18   :  { %642 = vmatpush.bf16.msra.mxu2 %v1500_v22  ;;  %v1539_v7 = vld [vmem:[%s2009_s1 + $0x1c8] sm:$0xff]  ;;  %v1522_v9 = vld [vmem:[%s2009_s1 + $0x140] sm:$0xff]  ;;  %v1480_v13 = vld [vmem:[%s2011_s0 + $0x2c] sm:$0xf0] }
  0x19   :  { %656 = vmatpush.bf16.msra.mxu3 %v1508_v23  ;;  %v1530_v10 = vld [vmem:[%s2009_s1 + $0x180] sm:$0xff]  ;;  %v1476_v14 = vld [vmem:[%s2011_s0 + $0x14] sm:$0xf]  ;;  %v1131_v16 = vld [vmem:[%s2011_s0 + $0x18] sm:$0xf]  ;;  %v1124_v20 = vor.u32 %v1480_v13, %v1123_v12 }
  0x1a   :  { %615 = vmatpush.bf16.msra.mxu0 %v1483_v24  ;;  %v1538_v11 = vld [vmem:[%s2009_s1 + $0x1c0] sm:$0xff]  ;;  %v1125_v15 = vld [vmem:[%s2011_s0 + $0x30] sm:$0xf0]  ;;  %v1481_v17 = vld [vmem:[%s2011_s0 + $0x34] sm:$0xf0] }
  0x1b   :  { %629 = vmatpush.bf16.msra.mxu1 %v1491_v25  ;;  %v1477_v18 = vld [vmem:[%s2011_s0 + $0x1c] sm:$0xf]  ;;  %v1128_v21 = vor.u32 %v1476_v14, %v1125_v15  ;;  %v1132_v22 = vor.u32 %v1481_v17, %v1131_v16  ;;  %v1548_v25 = vld [vmem:[%s2014_s3 + $0x10] sm:$0xff] }
  0x1c   :  { %643 = vmatpush.bf16.msra.mxu2 %v1499_v26  ;;  %v1133_v19 = vld [vmem:[%s2011_s0 + $0x38] sm:$0xf0]  ;;  %v1547_v26 = vld [vmem:[%s2014_s3 + $0x8] sm:$0xff]  ;;  %v1556_v14 = vld [vmem:[%s2018_s7 + $0x30] sm:$0xff] }
  0x1d   :  { %657 = vmatpush.bf16.msra.mxu3 %v1507_v27  ;;  %v1136_v23 = vor.u32 %v1477_v18, %v1133_v19  ;;  %v1549_v24 = vld [vmem:[%s2014_s3 + $0x18] sm:$0xff] }
  0x1e   :  { %616 = vmatpush.bf16.msra.mxu0 %v1482_v28 }
  0x1f   :  { %630 = vmatpush.bf16.msra.mxu1 %v1490_v29  ;;  %v1546_v29 = vld [vmem:[%s2014_s3] sm:$0xff] }
  0x20   :  { %644 = vmatpush.bf16.msra.mxu2 %v1498_v30 }
  0x21   :  { %658 = vmatpush.bf16.msra.mxu3 %v1506_v31  ;;  %617 = vmatmul.bf16.vlgmr.msra.gmra.mxu0 %v1108_v45 }
  0x22   :  { %665 = vmatpush.bf16.msrb.mxu0 %v1521_v32  ;;  %631 = vmatmul.bf16.vlgmr.msra.gmra.mxu1 %v1112_v47  ;;  %v1568_v32 = vld [vmem:[%s2010_s2] ss:$0 sm:$0xff] }
  0x23   :  { %679 = vmatpush.bf16.msrb.mxu1 %v1529_v33  ;;  %645 = vmatmul.bf16.vlgmr.msra.gmra.mxu2 %v1116_v44 }
  0x24   :  { %693 = vmatpush.bf16.msrb.mxu2 %v1537_v42  ;;  %659 = vmatmul.bf16.vlgmr.msra.gmra.mxu3 %v1120_v46 }
  0x25   :  { %707 = vmatpush.bf16.msrb.mxu3 %v1545_v43 }
  0x26   :  { %666 = vmatpush.bf16.msrb.mxu0 %v1520_v48 }
  0x27   :  { %680 = vmatpush.bf16.msrb.mxu1 %v1528_v49 }
  0x28   :  { %694 = vmatpush.bf16.msrb.mxu2 %v1536_v50 }
  0x29   :  { %708 = vmatpush.bf16.msrb.mxu3 %v1544_v51 }
  0x2a   :  { %667 = vmatpush.bf16.msrb.mxu0 %v1519_v52 }
  0x2b   :  { %681 = vmatpush.bf16.msrb.mxu1 %v1527_v53 }
  0x2c   :  { %695 = vmatpush.bf16.msrb.mxu2 %v1535_v54 }
  0x2d   :  { %709 = vmatpush.bf16.msrb.mxu3 %v1543_v55 }
  0x2e   :  { %668 = vmatpush.bf16.msrb.mxu0 %v1518_v56 }
  0x2f   :  { %682 = vmatpush.bf16.msrb.mxu1 %v1526_v57 }
  0x30   :  { %696 = vmatpush.bf16.msrb.mxu2 %v1534_v58 }
  0x31   :  { %710 = vmatpush.bf16.msrb.mxu3 %v1542_v59 }
  0x32   :  { %669 = vmatpush.bf16.msrb.mxu0 %v1517_v60 }
  0x33   :  { %683 = vmatpush.bf16.msrb.mxu1 %v1525_v61 }
  0x34   :  { %697 = vmatpush.bf16.msrb.mxu2 %v1533_v62  ;;  %v1586_v62 = vmov 8.0  }
  0x35   :  { %711 = vmatpush.bf16.msrb.mxu3 %v1541_v63  ;;  %1576 = vrcp.f32 %v1586_v62  ;;  %v1570_v62 = vld [vmem:[%s2013_s5] ss:$0 sm:$0xff] }
  0x36   :  { %670 = vmatpush.bf16.msrb.mxu0 %v1516_v0 }
  0x37   :  { %684 = vmatpush.bf16.msrb.mxu1 %v1524_v1  ;;  %v1569_v1 = vld [vmem:[%s2012_s4] ss:$0 sm:$0xff] }
  0x38   :  { %698 = vmatpush.bf16.msrb.mxu2 %v1532_v2 }
  0x39   :  { %712 = vmatpush.bf16.msrb.mxu3 %v1540_v3 }
  0x3a   :  { %671 = vmatpush.bf16.msrb.mxu0 %v1515_v4 }
  0x3b   :  { %685 = vmatpush.bf16.msrb.mxu1 %v1523_v5  ;;  %v1577_v63 = vpop.eup %1576 }
  0x3c   :  { %699 = vmatpush.bf16.msrb.mxu2 %v1531_v6  ;;  %v785_v0 = vmul.f32 8.0, %v1577_v63  ;;  %vm789_vm1 = vweird.f32 %v1577_v63 }
  0x3d   :  { %713 = vmatpush.bf16.msrb.mxu3 %v1539_v7 }
  0x3e   :  { %672 = vmatpush.bf16.msrb.mxu0 %v1514_v8  ;;  %v786_v3 = vsub.f32 1.0, %v785_v0  ;;  %v1557_v8 = vld [vmem:[%s2018_s7 + $0x38] sm:$0xff] }
  0x3f   :  { %686 = vmatpush.bf16.msrb.mxu1 %v1522_v9 }
  0x40   :  { %700 = vmatpush.bf16.msrb.mxu2 %v1530_v10  ;;  %v787_v6 = vmul.f32 %v1577_v63, %v786_v3 }
  0x41   :  { %714 = vmatpush.bf16.msrb.mxu3 %v1538_v11  ;;  %673 = vmatmul.bf16.vlgmr.msrb.gmra.mxu0 %v1124_v20  ;;  %v1555_v20 = vld [vmem:[%s2018_s7 + $0x28] sm:$0xff] }
  0x42   :  { %687 = vmatmul.bf16.vlgmr.msrb.gmra.mxu1 %v1128_v21  ;;  %766 = vmatpush.bf16.msra.mxu0 %v1549_v24  ;;  %v788_v10 = vadd.f32 %v1577_v63, %v787_v6 }
  0x43   :  { %701 = vmatmul.bf16.vlgmr.msrb.gmra.mxu2 %v1132_v22  ;;  %922 = vmatpush.bf16.msra.mxu1 %v1557_v8 }
  0x44   :  { %715 = vmatmul.bf16.vlgmr.msrb.gmra.mxu3 %v1136_v23  ;;  %v1929_v17 = vsel %vm789_vm1, %v1577_v63, %v788_v10 }
  0x46   :  { %767 = vmatpush.bf16.msra.mxu0 %v1548_v25  ;;  %v1554_v25 = vld [vmem:[%s2018_s7 + $0x20] sm:$0xff] }
  0x47   :  { %923 = vmatpush.bf16.msra.mxu1 %v1556_v14 }
  0x4a   :  { %768 = vmatpush.bf16.msra.mxu0 %v1547_v26 }
  0x4b   :  { %924 = vmatpush.bf16.msra.mxu1 %v1555_v20 }
  0x4e   :  { %769 = vmatpush.bf16.msra.mxu0 %v1546_v29 }
  0x4f   :  { %925 = vmatpush.bf16.msra.mxu1 %v1554_v25 }
  0x9e   :  { %v618_v27 = vpop.f32.mrf.mxu0 }
  0x9f   :  { %v632_v28 = vpop.f32.mrf.mxu1  ;;  %v619_v34 = vadd.f32 %v1568_v32, %v618_v27 }
  0xa1   :  { %v633_v37 = vadd.f32 %v632_v28, %v619_v34 }
  0xa6   :  { %v646_v30 = vpop.f32.mrf.mxu2  ;;  %v620_v33 = vpop.f32.mrf.mxu0 }
  0xa7   :  { %v660_v31 = vpop.f32.mrf.mxu3  ;;  %v634_v35 = vpop.f32.mrf.mxu1  ;;  %v621_v36 = vadd.f32 %v1568_v32, %v620_v33  ;;  %v647_v42 = vadd.f32 %v646_v30, %v633_v37  ;;  %v1553_v30 = vld [vmem:[%s2018_s7 + $0x18] sm:$0xff] }
  0xa8   :  { %926 = vmatpush.bf16.msra.mxu1 %v1553_v30 }
  0xa9   :  { %v635_v40 = vadd.f32 %v634_v35, %v621_v36  ;;  %v661_v45 = vadd.f32 %v660_v31, %v647_v42  ;;  %v1552_v35 = vld [vmem:[%s2018_s7 + $0x10] sm:$0xff] }
  0xac   :  { %927 = vmatpush.bf16.msra.mxu1 %v1552_v35 }
  0xae   :  { %v648_v38 = vpop.f32.mrf.mxu2 }
  0xaf   :  { %v662_v39 = vpop.f32.mrf.mxu3  ;;  %v649_v44 = vadd.f32 %v648_v38, %v635_v40  ;;  %v1551_v40 = vld [vmem:[%s2018_s7 + $0x8] sm:$0xff] }
  0xb0   :  { %928 = vmatpush.bf16.msra.mxu1 %v1551_v40 }
  0xb1   :  { %v663_v48 = vadd.f32 %v662_v39, %v649_v44 }
  0xbe   :  { %v674_v41 = vpop.f32.mrf.mxu0 }
  0xbf   :  { %v688_v43 = vpop.f32.mrf.mxu1  ;;  %v675_v49 = vadd.f32 %v674_v41, %v661_v45 }
  0xc1   :  { %v689_v52 = vadd.f32 %v688_v43, %v675_v49  ;;  %v1550_v43 = vld [vmem:[%s2018_s7] sm:$0xff]  ;;  %s1587_s7 = smov 64  }
  0xc2   :  { %929 = vmatpush.bf16.msra.mxu1 %v1550_v43 }
  0xc6   :  { %v702_v46 = vpop.f32.mrf.mxu2  ;;  %v676_v50 = vpop.f32.mrf.mxu0 }
  0xc7   :  { %v716_v47 = vpop.f32.mrf.mxu3  ;;  %v677_v51 = vadd.f32 %v676_v50, %v663_v48  ;;  %v690_v53 = vpop.f32.mrf.mxu1  ;;  %v703_v54 = vadd.f32 %v702_v46, %v689_v52 }
  0xc9   :  { %v691_v55 = vadd.f32 %v690_v53, %v677_v51  ;;  %v1913_v59 = vadd.f32 %v716_v47, %v703_v54 }
  0xce   :  { %v704_v56 = vpop.f32.mrf.mxu2 }
  0xcf   :  { %v705_v57 = vadd.f32 %v704_v56, %v691_v55  ;;  %v718_v58 = vpop.f32.mrf.mxu3 }
  0xd1   :  { %v1915_v60 = vadd.f32 %v718_v58, %v705_v57 }
  0xd3   :  { %v721_v61 = vpack.c.bf16 %v1915_v60, %v1913_v59 }
  0xd5   :  { %1409 = vmatmul.msk.bf16.vlgmr.msra.gmra.mxu0 %vm758_vm0, %v721_v61 }
 0x152   :  { %v771_v2 = vpop.f32.mrf.mxu0 }
 0x153   :  { %v772_v4 = vadd.f32 %v1569_v1, %v771_v2 }
 0x155   :  { %v778_v5 = vrot.slane %v772_v4, 4 }
 0x157   :  { %v779_v7 = vadd.f32 %v778_v5, %v772_v4  ;;  %v1571_v5 = vld [vmem:[%s2015_s6] ss:$0 sm:$0xff] }
 0x159   :  { %v780_v9 = vrot.slane %v779_v7, 2 }
 0x15a   :  { %v773_v11 = vpop.f32.mrf.mxu0 }
 0x15b   :  { %v781_v12 = vadd.f32 %v780_v9, %v779_v7  ;;  %v774_v13 = vadd.f32 %v1569_v1, %v773_v11 }
 0x15d   :  { %v782_v15 = vrot.slane %v781_v12, 1  ;;  %v821_v16 = vrot.slane %v774_v13, 4 }
 0x15f   :  { %v783_v18 = vadd.f32 %v782_v15, %v781_v12  ;;  %v822_v19 = vadd.f32 %v821_v16, %v774_v13  ;;  %v1572_v15 = vld [vmem:[%s2016_s8] ss:$0 sm:$0xff] }
 0x161   :  { %v791_v21 = vmul.f32 %v1929_v17, %v783_v18  ;;  %v823_v22 = vrot.slane %v822_v19, 2 }
 0x163   :  { %v792_v23 = vsub.f32 %v772_v4, %v791_v21  ;;  %v824_v24 = vadd.f32 %v823_v22, %v822_v19  ;;  %v1565_v21 = vld [vmem:[%s2021_s11 + $0x38] sm:$0xff] }
 0x164   :  { %1075 = vmatpush.bf16.msra.mxu2 %v1565_v21 }
 0x165   :  { %v793_v26 = vmul.f32 %v792_v23, %v792_v23  ;;  %v825_v27 = vrot.slane %v824_v24, 1  ;;  %v804_v2 = vmul.f32 %v1570_v62, %v792_v23 }
 0x167   :  { %v794_v28 = vrot.slane %v793_v26, 4  ;;  %v826_v29 = vadd.f32 %v825_v27, %v824_v24 }
 0x169   :  { %v795_v31 = vadd.f32 %v794_v28, %v793_v26  ;;  %v827_v32 = vmul.f32 %v826_v29, %v1929_v17  ;;  %v1564_v26 = vld [vmem:[%s2021_s11 + $0x30] sm:$0xff] }
 0x16a   :  { %1076 = vmatpush.bf16.msra.mxu2 %v1564_v26  ;;  %v1575_v26 = vld [vmem:[%s2020_s12] ss:$0 sm:$0xff] }
 0x16b   :  { %v796_v33 = vrot.slane %v795_v31, 2  ;;  %v828_v34 = vsub.f32 %v774_v13, %v827_v32 }
 0x16d   :  { %v797_v36 = vadd.f32 %v796_v33, %v795_v31  ;;  %v829_v37 = vmul.f32 %v828_v34, %v828_v34  ;;  %v837_v7 = vmul.f32 %v1570_v62, %v828_v34  ;;  %v1563_v31 = vld [vmem:[%s2021_s11 + $0x28] sm:$0xff] }
 0x16e   :  { %1077 = vmatpush.bf16.msra.mxu2 %v1563_v31 }
 0x16f   :  { %v798_v38 = vrot.slane %v797_v36, 1  ;;  %v830_v39 = vrot.slane %v829_v37, 4 }
 0x171   :  { %v799_v41 = vadd.f32 %v798_v38, %v797_v36  ;;  %v831_v42 = vadd.f32 %v830_v39, %v829_v37  ;;  %v1562_v36 = vld [vmem:[%s2021_s11 + $0x20] sm:$0xff] }
 0x172   :  { %1078 = vmatpush.bf16.msra.mxu2 %v1562_v36 }
 0x173   :  { %v800_v44 = vmul.f32 %v799_v41, %v1929_v17  ;;  %v832_v45 = vrot.slane %v831_v42, 2  ;;  %v1561_v41 = vld [vmem:[%s2021_s11 + $0x18] sm:$0xff] }
 0x175   :  { %v805_v46 = vadd.f32 1e-05, %v800_v44  ;;  %v833_v47 = vadd.f32 %v832_v45, %v831_v42 }
 0x176   :  { %1079 = vmatpush.bf16.msra.mxu2 %v1561_v41 }
 0x177   :  { %1578 = vrsqrt.f32 %v805_v46  ;;  %v834_v48 = vrot.slane %v833_v47, 1  ;;  %vm812_vm3 = vweird.f32 %v805_v46 }
 0x179   :  { %v835_v49 = vadd.f32 %v834_v48, %v833_v47 }
 0x17b   :  { %v836_v50 = vmul.f32 %v835_v49, %v1929_v17 }
 0x17d   :  { %v1579_v51 = vpop.eup %1578  ;;  %v838_v52 = vadd.f32 1e-05, %v836_v50 }
 0x17e   :  { %v807_v53 = vmul.f32 %v1579_v51, %v805_v46  ;;  %vm813_vm2 = vweird.f32 %v1579_v51  ;;  %v1560_v46 = vld [vmem:[%s2021_s11 + $0x10] sm:$0xff] }
 0x17f   :  { %1580 = vrsqrt.f32 %v838_v52  ;;  %vm814_vm4 = vmor %vm812_vm3, %vm813_vm2  ;;  %vm845_vm6 = vweird.f32 %v838_v52  ;;  %1080 = vmatpush.bf16.msra.mxu2 %v1560_v46 }
 0x180   :  { %v808_v54 = vmul.f32 %v1579_v51, %v807_v53 }
 0x182   :  { %v809_v55 = vmul.f32 0.5, %v808_v54  ;;  %v1558_v54 = vld [vmem:[%s2021_s11] sm:$0xff] }
 0x184   :  { %v810_v56 = vsub.f32 1.5, %v809_v55 }
 0x185   :  { %v1581_v57 = vpop.eup %1580 }
 0x186   :  { %v811_v58 = vmul.f32 %v1579_v51, %v810_v56  ;;  %v840_v61 = vmul.f32 %v1581_v57, %v838_v52  ;;  %vm846_vm5 = vweird.f32 %v1581_v57 }
 0x187   :  { %vm847_vm7 = vmor %vm845_vm6, %vm846_vm5 }
 0x188   :  { %v841_v63 = vmul.f32 %v1581_v57, %v840_v61  ;;  %v815_v0 = vsel %vm814_vm4, %v1579_v51, %v811_v58  ;;  %v1559_v51 = vld [vmem:[%s2021_s11 + $0x8] sm:$0xff] }
 0x189   :  { %v816_v4 = vmul.f32 %v815_v0, %v804_v2  ;;  %1081 = vmatpush.bf16.msra.mxu2 %v1559_v51 }
 0x18a   :  { %v842_v1 = vmul.f32 0.5, %v841_v63 }
 0x18b   :  { %v820_v10 = vadd.f32 %v1571_v5, %v816_v4 }
 0x18c   :  { %v843_v3 = vsub.f32 1.5, %v842_v1 }
 0x18d   :  { %v851_v12 = vmax.f32 %v820_v10, 0.0  ;;  %1082 = vmatpush.bf16.msra.mxu2 %v1558_v54 }
 0x18e   :  { %v844_v6 = vmul.f32 %v1581_v57, %v843_v3 }
 0x190   :  { %v848_v8 = vsel %vm847_vm7, %v1581_v57, %v844_v6 }
 0x191   :  { %v849_v9 = vmul.f32 %v848_v8, %v837_v7 }
 0x193   :  { %v850_v11 = vadd.f32 %v1571_v5, %v849_v9  ;;  %v1573_v9 = vld [vmem:[%s2017_s9] ss:$0 sm:$0xff] }
 0x195   :  { %v852_v13 = vmax.f32 %v850_v11, 0.0 }
 0x197   :  { %v853_v14 = vpack.c.bf16 %v852_v13, %v851_v12 }
 0x199   :  { %930 = vmatmul.bf16.vlgmr.msra.gmra.mxu1 %v853_v14 }
 0x216   :  { %v931_v16 = vpop.f32.mrf.mxu1 }
 0x217   :  { %v932_v18 = vadd.f32 %v1572_v15, %v931_v16 }
 0x219   :  { %v938_v19 = vrot.slane %v932_v18, 4 }
 0x21b   :  { %v939_v20 = vadd.f32 %v938_v19, %v932_v18 }
 0x21d   :  { %v940_v22 = vrot.slane %v939_v20, 2 }
 0x21e   :  { %v933_v23 = vpop.f32.mrf.mxu1 }
 0x21f   :  { %v941_v24 = vadd.f32 %v940_v22, %v939_v20  ;;  %v934_v25 = vadd.f32 %v1572_v15, %v933_v23  ;;  %v1574_v15 = vld [vmem:[%s2019_s10] ss:$0 sm:$0xff] }
 0x221   :  { %v942_v27 = vrot.slane %v941_v24, 1  ;;  %v974_v28 = vrot.slane %v934_v25, 4 }
 0x223   :  { %v943_v29 = vadd.f32 %v942_v27, %v941_v24  ;;  %v975_v30 = vadd.f32 %v974_v28, %v934_v25 }
 0x225   :  { %v944_v32 = vmul.f32 %v943_v29, %v1929_v17  ;;  %v976_v33 = vrot.slane %v975_v30, 2 }
 0x227   :  { %v945_v34 = vsub.f32 %v932_v18, %v944_v32  ;;  %v977_v35 = vadd.f32 %v976_v33, %v975_v30 }
 0x229   :  { %v946_v37 = vmul.f32 %v945_v34, %v945_v34  ;;  %v978_v38 = vrot.slane %v977_v35, 1  ;;  %v957_v12 = vmul.f32 %v1573_v9, %v945_v34 }
 0x22b   :  { %v947_v39 = vrot.slane %v946_v37, 4  ;;  %v979_v40 = vadd.f32 %v978_v38, %v977_v35 }
 0x22d   :  { %v948_v42 = vadd.f32 %v947_v39, %v946_v37  ;;  %v980_v43 = vmul.f32 %v979_v40, %v1929_v17 }
 0x22f   :  { %v949_v44 = vrot.slane %v948_v42, 2  ;;  %v981_v45 = vsub.f32 %v934_v25, %v980_v43 }
 0x231   :  { %v950_v47 = vadd.f32 %v949_v44, %v948_v42  ;;  %v982_v48 = vmul.f32 %v981_v45, %v981_v45  ;;  %v990_v18 = vmul.f32 %v1573_v9, %v981_v45 }
 0x233   :  { %v951_v49 = vrot.slane %v950_v47, 1  ;;  %v983_v50 = vrot.slane %v982_v48, 4 }
 0x235   :  { %v952_v52 = vadd.f32 %v951_v49, %v950_v47  ;;  %v984_v53 = vadd.f32 %v983_v50, %v982_v48 }
 0x237   :  { %v953_v55 = vmul.f32 %v952_v52, %v1929_v17  ;;  %v985_v56 = vrot.slane %v984_v53, 2 }
 0x239   :  { %v958_v57 = vadd.f32 1e-05, %v953_v55  ;;  %v986_v58 = vadd.f32 %v985_v56, %v984_v53 }
 0x23b   :  { %1582 = vrsqrt.f32 %v958_v57  ;;  %v987_v61 = vrot.slane %v986_v58, 1  ;;  %vm965_vm9 = vweird.f32 %v958_v57 }
 0x23d   :  { %v988_v62 = vadd.f32 %v987_v61, %v986_v58 }
 0x23f   :  { %v989_v63 = vmul.f32 %v988_v62, %v1929_v17 }
 0x241   :  { %v1583_v0 = vpop.eup %1582  ;;  %v991_v1 = vadd.f32 1e-05, %v989_v63 }
 0x242   :  { %v960_v2 = vmul.f32 %v1583_v0, %v958_v57  ;;  %vm966_vm8 = vweird.f32 %v1583_v0 }
 0x243   :  { %1584 = vrsqrt.f32 %v991_v1  ;;  %vm967_vm10 = vmor %vm965_vm9, %vm966_vm8  ;;  %vm998_vm12 = vweird.f32 %v991_v1 }
 0x244   :  { %v961_v3 = vmul.f32 %v1583_v0, %v960_v2 }
 0x246   :  { %v962_v4 = vmul.f32 0.5, %v961_v3 }
 0x248   :  { %v963_v5 = vsub.f32 1.5, %v962_v4 }
 0x249   :  { %v1585_v6 = vpop.eup %1584 }
 0x24a   :  { %v964_v7 = vmul.f32 %v1583_v0, %v963_v5  ;;  %v993_v8 = vmul.f32 %v1585_v6, %v991_v1  ;;  %vm999_vm11 = vweird.f32 %v1585_v6 }
 0x24b   :  { %vm1000_vm13 = vmor %vm998_vm12, %vm999_vm11 }
 0x24c   :  { %v994_v10 = vmul.f32 %v1585_v6, %v993_v8  ;;  %v968_v11 = vsel %vm967_vm10, %v1583_v0, %v964_v7 }
 0x24d   :  { %v969_v14 = vmul.f32 %v968_v11, %v957_v12 }
 0x24e   :  { %v995_v17 = vmul.f32 0.5, %v994_v10 }
 0x24f   :  { %v973_v21 = vadd.f32 %v1574_v15, %v969_v14 }
 0x250   :  { %v996_v13 = vsub.f32 1.5, %v995_v17 }
 0x251   :  { %v1004_v23 = vmax.f32 %v973_v21, 0.0 }
 0x252   :  { %v997_v16 = vmul.f32 %v1585_v6, %v996_v13 }
 0x254   :  { %v1001_v19 = vsel %vm1000_vm13, %v1585_v6, %v997_v16 }
 0x255   :  { %v1002_v20 = vmul.f32 %v1001_v19, %v990_v18 }
 0x257   :  { %v1003_v22 = vadd.f32 %v1574_v15, %v1002_v20 }
 0x259   :  { %v1005_v24 = vmax.f32 %v1003_v22, 0.0 }
 0x25b   :  { %v1006_v25 = vpack.c.bf16 %v1005_v24, %v1004_v23 }
 0x25d   :  { %1083 = vmatmul.bf16.vlgmr.msra.gmra.mxu2 %v1006_v25 }
 0x2e0   :  { %v1084_v27 = vpop.f32.mrf.mxu2 }
 0x2e1   :  { %v1085_v28 = vadd.f32 %v1575_v26, %v1084_v27 }
 0x2e3   :  { %1091 = vrot.lane.b32.xlu0 %v1085_v28, %s1587_s7 }
 0x2e8   :  { %v1086_v29 = vpop.f32.mrf.mxu2 }
 0x2e9   :  { %v1087_v30 = vadd.f32 %v1575_v26, %v1086_v29 }
 0x2eb   :  { %1093 = vrot.lane.b32.xlu0 %v1087_v30, %s1587_s7 }
 0x355   :  { %v1092_v31 = vpop.permute.xlu0 %1091 }
 0x356   :  { %v1097_v32 = vsel %vm758_vm0, %v1913_v59, %v1092_v31 }
 0x357   :  { %1099 = vst [vmem:[%s2022_s13] sm:$0xff] %v1097_v32 }
 0x35d   :  { %v1094_v33 = vpop.permute.xlu0 %1093 }
 0x35e   :  { %v1098_v34 = vsel %vm758_vm0, %v1915_v60, %v1094_v33 }
 0x35f   :  { %1100 = vst [vmem:[%s2022_s13 + $0x8] sm:$0xff] %v1098_v34 }

// kernel: coherence_net_forward.3
= control target key start
LH: loop header
LB: loop body
LE: loop exit
PB: predicated region body
PF: predicated region fallthrough
CT: control target
= control target key end

     0   :  { %11 = vsyncpa [#allocation3], 0  ;;  %s503_s0 = inlined_call_operand.vmem [shape: f32[1,4], index: 0, kind: input, shape index: {}]   ;;  %s504_s1 = inlined_call_operand.vmem [shape: f32[16,64], index: 1, kind: input, shape index: {}]   ;;  %s505_s2 = inlined_call_operand.vmem [shape: f32[16,64], index: 2, kind: input, shape index: {}]   ;;  %s506_s3 = inlined_call_operand.vmem [shape: f32[16,64], index: 3, kind: input, shape index: {}]   ;;  %s507_s4 = inlined_call_operand.vmem [shape: f32[64,128], index: 4, kind: input, shape index: {}]   ;;  %s508_s5 = inlined_call_operand.vmem [shape: f32[64,128], index: 5, kind: input, shape index: {}]   ;;  %s509_s6 = inlined_call_operand.vmem [shape: f32[1,3], index: 6, kind: output, shape index: {}]  }
   0x1   :  { %12 = vsyncpa [#allocation4], 0  ;;  %s18_s23 = sshll.u32 %s503_s0, 4  ;;  %s359_s24 = smov [#allocation2]   ;;  %s19_s23 = int_to_ptr.vmem [resolvable:$true] %s18_s23 }
   0x2   :  { %21 = dma.vmem_to_smem %s19_s23, 16, %s359_s24, [#allocation3]  }
   0x3   :  { %355 = dma.done.wait [#allocation3], 16  }
   0x4   :  { %356 = vsyncadd [#allocation3], 4294967280 }
   0x5   :  { %36 = sfence }
   0x6   :  { %v114_v0 = vld [vmem:[%s507_s4 + $0x38] sm:$0xff]  ;;  %v113_v1 = vld [vmem:[%s507_s4 + $0x30] sm:$0xff]  ;;  %v112_v2 = vld [vmem:[%s507_s4 + $0x28] sm:$0xff]  ;;  %vm60_vm0 = vcmask 523264   ;;  %s360_s7 = smov 64   ;;  %s470_s10 = sld [smem:[#allocation2 + $0x3]] }
   0x7   :  { %129 = vmatpush.msra.mxu0 %v114_v0  ;;  %v111_v3 = vld [vmem:[%s507_s4 + $0x20] sm:$0xff]  ;;  %v110_v4 = vld [vmem:[%s507_s4 + $0x18] sm:$0xff]  ;;  %v109_v5 = vld [vmem:[%s507_s4 + $0x10] sm:$0xff]  ;;  %s472_s11 = sld [smem:[#allocation2 + $0x2]]  ;;  %vm243_vm5 = vcmask 72704   ;;  %s274_s0 = sshll.u32 %s509_s6, 4  ;;  %s275_s0 = int_to_ptr.vmem [resolvable:$true] %s274_s0 }
   0x8   :  { %v108_v6 = vld [vmem:[%s507_s4 + $0x8] sm:$0xff]  ;;  %v107_v7 = vld [vmem:[%s507_s4] sm:$0xff]  ;;  %v179_v10 = vld [vmem:[%s508_s5 + $0x38] sm:$0xff]  ;;  %s474_s12 = sld [smem:[#allocation2]] }
   0x9   :  { %130 = vmatpush.msra.mxu0 %v113_v1  ;;  %v429_v8 = vld [vmem:[%s504_s1] sm:$0xff]  ;;  %v436_v9 = vld [vmem:[%s504_s1 + $0x8] sm:$0xff]  ;;  %v178_v11 = vld [vmem:[%s508_s5 + $0x30] sm:$0xff]  ;;  %200 = vmatpush.msra.mxu1 %v179_v10 }
   0xa   :  { %295 = vmatpush.msra.mxu3 %v179_v10  ;;  %v177_v12 = vld [vmem:[%s508_s5 + $0x28] sm:$0xff]  ;;  %294 = vmatpush.msra.mxu2 %v179_v10  ;;  %v176_v13 = vld [vmem:[%s508_s5 + $0x20] sm:$0xff]  ;;  %v175_v14 = vld [vmem:[%s508_s5 + $0x18] sm:$0xff] }
   0xb   :  { %131 = vmatpush.msra.mxu0 %v112_v2  ;;  %201 = vmatpush.msra.mxu1 %v178_v11  ;;  %v174_v15 = vld [vmem:[%s508_s5 + $0x10] sm:$0xff]  ;;  %v173_v16 = vld [vmem:[%s508_s5 + $0x8] sm:$0xff]  ;;  %v172_v22 = vld [vmem:[%s508_s5] sm:$0xff]  ;;  %s468_s5 = sld [smem:[#allocation2 + $0x1]] }
   0xc   :  { %297 = vmatpush.msra.mxu3 %v178_v11  ;;  %296 = vmatpush.msra.mxu2 %v178_v11  ;;  %v56_v34 = vstv %s470_s10  ;;  %v40_v35 = vld [vmem:[%s505_s2 + $0x8] sm:$0xff]  ;;  %v39_v37 = vld [vmem:[%s505_s2] sm:$0xff] }
   0xd   :  { %132 = vmatpush.msra.mxu0 %v111_v3  ;;  %202 = vmatpush.msra.mxu1 %v177_v12  ;;  %v53_v36 = vstv %s472_s11  ;;  %v57_v40 = vmul.f32 %v56_v34, %v436_v9  ;;  %v42_v43 = vld [vmem:[%s506_s3 + $0x8] sm:$0xff]  ;;  %v41_v44 = vld [vmem:[%s506_s3] sm:$0xff] }
   0xe   :  { %299 = vmatpush.msra.mxu3 %v177_v12  ;;  %298 = vmatpush.msra.mxu2 %v177_v12  ;;  %v47_v38 = vstv %s474_s12  ;;  %v54_v41 = vmul.f32 %v53_v36, %v40_v35  ;;  %s101_s2 = ssub.f32 %s474_s12, %s472_s11  ;;  %v361_v12 = vmov 512.0  }
   0xf   :  { %133 = vmatpush.msra.mxu0 %v110_v4  ;;  %203 = vmatpush.msra.mxu1 %v176_v13  ;;  %v48_v42 = vmul.f32 %v47_v38, %v39_v37 }
  0x10   :  { %301 = vmatpush.msra.mxu3 %v176_v13  ;;  %300 = vmatpush.msra.mxu2 %v176_v13  ;;  %v55_v46 = vadd.f32 %v54_v41, %v42_v43  ;;  %s102_s20 = smul.f32 %s101_s2, %s101_s2 }
  0x11   :  { %134 = vmatpush.msra.mxu0 %v109_v5  ;;  %204 = vmatpush.msra.mxu1 %v175_v14  ;;  %v50_v33 = vstv %s468_s5  ;;  %v49_v47 = vadd.f32 %v48_v42, %v41_v44  ;;  %s103_s3 = ssub.f32 %s468_s5, %s470_s10  ;;  %s363_s5 = smov [#allocation5]  }
  0x12   :  { %303 = vmatpush.msra.mxu3 %v175_v14  ;;  %302 = vmatpush.msra.mxu2 %v175_v14  ;;  %v51_v39 = vmul.f32 %v50_v33, %v429_v8  ;;  %v58_v49 = vadd.f32 %v57_v40, %v55_v46  ;;  %v362_v33 = vmov 72.0  }
  0x13   :  { %135 = vmatpush.msra.mxu0 %v108_v6  ;;  %205 = vmatpush.msra.mxu1 %v174_v15  ;;  %s104_s21 = smul.f32 %s103_s3, %s103_s3 }
  0x14   :  { %305 = vmatpush.msra.mxu3 %v174_v15  ;;  %304 = vmatpush.msra.mxu2 %v174_v15  ;;  %v52_v50 = vadd.f32 %v51_v39, %v49_v47  ;;  %v80_v52 = vmul.f32 %v58_v49, %v58_v49 }
  0x15   :  { %136 = vmatpush.msra.mxu0 %v107_v7  ;;  %206 = vmatpush.msra.mxu1 %v173_v16  ;;  %s105_s22 = sadd.f32 %s104_s21, %s102_s20 }
  0x16   :  { %288 = vmatmul.msk.f32.vlgmr.msra.gmra.mxu0 %vm60_vm0, %v429_v8  ;;  %307 = vmatpush.msra.mxu3 %v173_v16  ;;  %v59_v53 = vmul.f32 %v52_v50, %v52_v50  ;;  %v81_v54 = vsel %vm60_vm0, %v80_v52, 0.0 }
  0x17   :  { %306 = vmatpush.msra.mxu2 %v173_v16  ;;  %207 = vmatpush.msra.mxu1 %v172_v22  ;;  %s106_s23 = ssub.f32 0.0, %s105_s22 }
  0x18   :  { %309 = vmatpush.msra.mxu3 %v172_v22  ;;  %v61_v55 = vsel %vm60_vm0, %v59_v53, 0.0 }
  0x19   :  { %308 = vmatpush.msra.mxu2 %v172_v22  ;;  %266 = sst [smem:[#allocation5 + $0x1]] %s106_s23 }
  0x1e   :  { %289 = vmatmul.msk.f32.gmra.mxu0 %vm60_vm0, %v436_v9 }
  0x93   :  { %v138_v17 = vpop.f32.mrf.mxu0 }
  0x94   :  { %v144_v18 = vmul.f32 %v138_v17, %v138_v17 }
  0x96   :  { %146 = vrot.lane.b32.xlu1 %v144_v18, %s360_s7 }
  0x9b   :  { %v141_v19 = vpop.f32.mrf.mxu0 }
  0x9c   :  { %v156_v20 = vmul.f32 %v141_v19, %v138_v17  ;;  %163 = vrot.lane.b32.xlu0 %v141_v19, %s360_s7  ;;  %v150_v21 = vmul.f32 %v141_v19, %v141_v19 }
  0x9e   :  { %158 = vrot.lane.b32.xlu1 %v156_v20, %s360_s7 }
  0xa4   :  { %152 = vrot.lane.b32.xlu0 %v150_v21, %s360_s7 }
  0xce   :  { %82 = vadd.xlane.f32.xlu0 %v81_v54 }
 0x108   :  { %v147_v23 = vpop.permute.xlu1 %146 }
 0x109   :  { %v149_v24 = vadd.f32 %v147_v23, %v144_v18 }
 0x10b   :  { %290 = vmatmul.msk.f32.vlgmr.msra.gmra.mxu1 %vm60_vm0, %v149_v24 }
 0x10e   :  { %v164_v25 = vpop.permute.xlu0 %163 }
 0x10f   :  { %v166_v26 = vmul.f32 %v164_v25, %v138_v17 }
 0x110   :  { %v159_v27 = vpop.permute.xlu1 %158 }
 0x111   :  { %v161_v28 = vadd.f32 %v159_v27, %v156_v20  ;;  %168 = vrot.lane.b32.xlu2 %v166_v26, %s360_s7 }
 0x113   :  { %292 = vmatmul.msk.f32.vlgmr.msra.gmra.mxu3 %vm60_vm0, %v161_v28 }
 0x116   :  { %v153_v29 = vpop.permute.xlu0 %152 }
 0x117   :  { %v155_v30 = vadd.f32 %v153_v29, %v150_v21 }
 0x119   :  { %291 = vmatmul.msk.f32.vlgmr.msra.gmra.mxu2 %vm60_vm0, %v155_v30 }
 0x13a   :  { %62 = vadd.xlane.f32.xlu2 %v61_v55 }
 0x141   :  { %v83_v13 = vpop.xlane.xlu0 %82 }
 0x142   :  { %v84_v15 = vrot.slane %v83_v13, 4 }
 0x144   :  { %v85_v18 = vadd.f32 %v84_v15, %v83_v13 }
 0x146   :  { %v86_v21 = vrot.slane %v85_v18, 2 }
 0x148   :  { %v87_v24 = vadd.f32 %v86_v21, %v85_v18 }
 0x14a   :  { %v88_v28 = vrot.slane %v87_v24, 1 }
 0x16b   :  { %v169_v31 = vpop.permute.xlu2 %168 }
 0x16c   :  { %v171_v32 = vsub.f32 %v166_v26, %v169_v31  ;;  %v89_v31 = vadd.f32 %v88_v28, %v87_v24 }
 0x16e   :  { %293 = vmatmul.msk.f32.gmra.mxu3 %vm60_vm0, %v171_v32 }
 0x188   :  { %v209_v48 = vpop.f32.mrf.mxu1 }
 0x196   :  { %v215_v60 = vpop.f32.mrf.mxu3 }
 0x197   :  { %v221_v2 = vmul.f32 %v215_v60, %v215_v60 }
 0x19c   :  { %v212_v45 = vpop.f32.mrf.mxu2 }
 0x19d   :  { %v224_v51 = vmul.f32 %v212_v45, %v209_v48 }
 0x19f   :  { %v225_v56 = vadd.f32 1e-12, %v224_v51 }
 0x1a1   :  { %325 = vrcp.f32 %v225_v56  ;;  %v237_v63 = vand.u32 2147483648, %v225_v56  ;;  %vm231_vm2 = vweird.f32 %v225_v56  ;;  %v235_v0 = vand.u32 2147483647, %v225_v56 }
 0x1a2   :  { %327 = vrcp.f32 %v361_v12 }
 0x1a3   :  { %v238_v5 = vor.u32 1.1754944e-38, %v237_v63  ;;  %vm236_vm4 = vcmp.eq.f32.partialorder %v235_v0, 8.507059e+37  ;;  %329 = vrcp.f32 %v362_v33 }
 0x1a7   :  { %v326_v57 = vpop.eup %325 }
 0x1a8   :  { %v227_v58 = vmul.f32 %v326_v57, %v225_v56  ;;  %vm232_vm1 = vweird.f32 %v326_v57  ;;  %v328_v17 = vpop.eup %327 }
 0x1a9   :  { %vm233_vm3 = vmor %vm231_vm2, %vm232_vm1  ;;  %v72_v20 = vmul.f32 512.0, %v328_v17  ;;  %vm76_vm6 = vweird.f32 %v328_v17  ;;  %v330_v34 = vpop.eup %329 }
 0x1aa   :  { %v228_v59 = vsub.f32 1.0, %v227_v58  ;;  %v255_v35 = vmul.f32 72.0, %v330_v34  ;;  %vm259_vm7 = vweird.f32 %v330_v34 }
 0x1ab   :  { %v73_v23 = vsub.f32 1.0, %v72_v20 }
 0x1ac   :  { %v229_v61 = vmul.f32 %v326_v57, %v228_v59  ;;  %v256_v36 = vsub.f32 1.0, %v255_v35 }
 0x1ad   :  { %v63_v14 = vpop.xlane.xlu2 %62  ;;  %v74_v26 = vmul.f32 %v328_v17, %v73_v23 }
 0x1ae   :  { %v230_v62 = vadd.f32 %v326_v57, %v229_v61  ;;  %v64_v16 = vrot.slane %v63_v14, 4  ;;  %v257_v40 = vmul.f32 %v330_v34, %v256_v36 }
 0x1af   :  { %v75_v29 = vadd.f32 %v328_v17, %v74_v26 }
 0x1b0   :  { %v234_v4 = vsel %vm233_vm3, %v326_v57, %v230_v62  ;;  %v65_v19 = vadd.f32 %v64_v16, %v63_v14  ;;  %v258_v43 = vadd.f32 %v330_v34, %v257_v40 }
 0x1b1   :  { %v239_v7 = vsel %vm236_vm4, %v238_v5, %v234_v4  ;;  %v77_v32 = vsel %vm76_vm6, %v328_v17, %v75_v29 }
 0x1b2   :  { %v66_v22 = vrot.slane %v65_v19, 2  ;;  %v260_v46 = vsel %vm259_vm7, %v330_v34, %v258_v43 }
 0x1b4   :  { %v67_v25 = vadd.f32 %v66_v22, %v65_v19 }
 0x1b6   :  { %v68_v27 = vrot.slane %v67_v25, 1 }
 0x1b8   :  { %v69_v30 = vadd.f32 %v68_v27, %v67_v25 }
 0x1ba   :  { %310 = vpush %v69_v30 }
 0x1bb   :  { %312 = vpush %v77_v32 }
 0x1bc   :  { %314 = vpush %v89_v31 }
 0x1eb   :  { %s311_s24 = spop %310 }
 0x1ec   :  { %s313_s1 = spop %312 }
 0x1ed   :  { %s79_s25 = smul.f32 %s313_s1, %s311_s24  ;;  %s315_s26 = spop %314 }
 0x1ee   :  { %s99_s27 = smul.f32 %s315_s26, %s313_s1 }
 0x1f0   :  { %s100_s28 = sadd.f32 %s99_s27, %s79_s25 }
 0x1f1   :  { %v218_v1 = vpop.f32.mrf.mxu3 }
 0x1f2   :  { %v222_v3 = vmul.f32 %v218_v1, %v218_v1  ;;  %264 = sst [smem:[#allocation5]] %s100_s28 }
 0x1f4   :  { %v223_v6 = vadd.f32 %v222_v3, %v221_v2 }
 0x1f6   :  { %v240_v8 = vmul.f32 %v239_v7, %v223_v6 }
 0x1f8   :  { %v241_v9 = vsub.f32 1.0, %v240_v8 }
 0x1fa   :  { %v242_v10 = vmul.f32 %v241_v9, %v241_v9 }
 0x1fc   :  { %v244_v11 = vsel %vm243_vm5, %v242_v10, 0.0 }
 0x1fd   :  { %245 = vadd.xlane.f32.xlu1 %v244_v11 }
 0x270   :  { %v246_v37 = vpop.xlane.xlu1 %245 }
 0x271   :  { %v247_v38 = vrot.slane %v246_v37, 4 }
 0x273   :  { %v248_v39 = vadd.f32 %v247_v38, %v246_v37 }
 0x275   :  { %v249_v41 = vrot.slane %v248_v39, 2 }
 0x277   :  { %v250_v42 = vadd.f32 %v249_v41, %v248_v39 }
 0x279   :  { %v251_v44 = vrot.slane %v250_v42, 1 }
 0x27b   :  { %v252_v45 = vadd.f32 %v251_v44, %v250_v42 }
 0x27d   :  { %316 = vpush %v252_v45 }
 0x27e   :  { %318 = vpush %v260_v46 }
 0x2ae   :  { %s317_s7 = spop %316 }
 0x2af   :  { %s319_s8 = spop %318 }
 0x2b0   :  { %s262_s9 = smul.f32 %s319_s8, %s317_s7 }
 0x2b2   :  { %268 = sst [smem:[#allocation5 + $0x2]] %s262_s9 }
 0x2b3   :  { %277 = dma.smem_to_vmem %s363_s5, 16, %s275_s0, [#allocation4]  }
 0x2b4   :  { %357 = dma.done.wait [#allocation4], 16  }
 0x2b5   :  { %358 = vsyncadd [#allocation4], 4294967280 }
 0x2b6   :  { %282 = sfence }
 0x2b7   :  { %283 = vsyncpa [#allocation3], 1 }
 0x2b8   :  { %284 = vsyncpa [#allocation4], 1 }

</bundles_post_ra>
